<compile_context>
chip_gen: v6e
topology: v6e:2x2x1
jax: 0.10.0
libtpu: 0.0.40
codegen_flags: <defaults>
</compile_context>

<pallas_src>
import math

import jax
import jax.numpy as jnp
from jax.experimental import pallas as pl
from jax.experimental.pallas import tpu as pltpu

NEG_SLOPE = 0.01          # nn.LeakyReLU() default negative_slope
IN_DIM = 2
OUT_DIM = 2
H_DIMS = [512] * 4
DIM_TIME = 32
HALF_DIM = DIM_TIME // 2
WEIGHT_DTYPE = jnp.bfloat16   # storage + MXU dtype for params (accum stays f32)


def _leaky(h):
    return jnp.where(h > 0, h, NEG_SLOPE * h)


# ---------------------------------------------------------------------------
# Fused kernel: time-embed + all 6 linear layers in one body.
# ---------------------------------------------------------------------------
def _fused_net_kernel(x_ref, t_ref, base2_ref,
                      w0x_ref, w0sc_ref, b0_ref,
                      w1_ref, b1_ref,
                      w2_ref, b2_ref,
                      w3_ref, b3_ref,
                      w4_ref, b4_ref,
                      w5_ref, b5_ref,
                      o_ref):
    f32 = jnp.float32
    bf16 = jnp.bfloat16

    x = x_ref[...].astype(f32)                                    # (TB, 2)
    t = t_ref[...].astype(f32)                                    # (TB, 1)

    # Time embedding: base duplicated to 32 lanes; sin on lanes [0,16),
    # cos on lanes [16,32) -> matches torch.cat((sin, cos), dim=-1).
    emb32 = t * base2_ref[...]                                    # (TB, 32)
    lane = jax.lax.broadcasted_iota(jnp.int32, emb32.shape, 1)
    sc = jnp.where(lane < HALF_DIM, jnp.sin(emb32), jnp.cos(emb32))

    # ---- layer 0: [x | sin | cos] @ W0 + b0.  Concat folded into one K=32
    # bf16 MXU dot; the K=2 x-columns are a cheap f32 VPU broadcast-sum.
    h = jnp.dot(sc.astype(bf16), w0sc_ref[...], preferred_element_type=f32)
    h = h + b0_ref[...].astype(f32)
    w0x = w0x_ref[...].astype(f32)                                # (2, 512)
    for c in range(IN_DIM):
        h = h + x[:, c:c + 1] * w0x[c:c + 1, :]
    h = _leaky(h)

    # ---- layers 1..4: bf16 x bf16 -> f32 MXU dots; bias/LeakyReLU in f32.
    # (layer 4 is the 512->2 contraction, kept in-register as an epilogue)
    for w_ref, b_ref in ((w1_ref, b1_ref), (w2_ref, b2_ref),
                         (w3_ref, b3_ref), (w4_ref, b4_ref)):
        h = jnp.dot(h.astype(bf16), w_ref[...], preferred_element_type=f32)
        h = _leaky(h + b_ref[...].astype(f32))

    # ---- output layer: 2 -> 2, no activation (K=2 -> f32 VPU broadcast-sum).
    w5 = w5_ref[...].astype(f32)                                  # (2, 2)
    out = b5_ref[...].astype(f32)
    for c in range(OUT_DIM):
        out = out + h[:, c:c + 1] * w5[c:c + 1, :]
    o_ref[...] = out.astype(o_ref.dtype)


def _pick_batch_tile(B):
    # Prefer >= 2 grid blocks (DMA/compute pipelining + v7x megacore sharding)
    # with the largest tile <= 1024 that divides B.  Tiny or awkward batches
    # fall back to a single whole-batch block (keeps (8,128) tiling legal).
    if B < 16:
        return B
    for tb in (1024, 512, 256, 128, 64, 32, 16, 8):
        if tb <= B // 2 and B % tb == 0:
            return tb
    return B


def net_forward_pallas(params, x, t, base):
    B = x.shape[0]
    (w0, b0), (w1, b1), (w2, b2), (w3, b3), (w4, b4), (w5, b5) = params

    # Split W0 (34, 512): x rows stay separate (VPU path); the sin/cos rows
    # are passed as one fused (32, 512) operand for a single K=32 MXU dot.
    w0x = w0[:IN_DIM]                                   # (2, 512)
    w0sc = w0[IN_DIM:]                                  # (32, 512) = [sin; cos]
    base2 = jnp.concatenate([base, base])[None, :]      # (1, 32) f32

    TB = _pick_batch_tile(B)
    n_blocks = B // TB

    def full(shape):
        # whole-array block, resident in VMEM, reused across all batch tiles
        return pl.BlockSpec(shape, lambda i: (0,) * len(shape))

    in_specs = [
        pl.BlockSpec((TB, IN_DIM), lambda i: (i, 0)),   # x
        pl.BlockSpec((TB, 1), lambda i: (i, 0)),        # t
        full(base2.shape),                              # duplicated time base
        full(w0x.shape), full(w0sc.shape), full((1, b0.shape[0])),
        full(w1.shape), full((1, b1.shape[0])),
        full(w2.shape), full((1, b2.shape[0])),
        full(w3.shape), full((1, b3.shape[0])),
        full(w4.shape), full((1, b4.shape[0])),
        full(w5.shape), full((1, b5.shape[0])),
    ]

    return pl.pallas_call(
        _fused_net_kernel,
        out_shape=jax.ShapeDtypeStruct((B, OUT_DIM), jnp.float32),
        grid=(n_blocks,),
        in_specs=in_specs,
        out_specs=pl.BlockSpec((TB, OUT_DIM), lambda i: (i, 0)),
        compiler_params=pltpu.CompilerParams(
            dimension_semantics=("parallel",),     # batch tiles shard on v7x
            vmem_limit_bytes=48 * 1024 * 1024,     # room for 1K-row tiles
        ),
    )(
        x, t[:, None].astype(jnp.float32), base2,
        w0x, w0sc, b0[None, :],
        w1, b1[None, :],
        w2, b2[None, :],
        w3, b3[None, :],
        w4, b4[None, :],
        w5, b5[None, :],
    )


# ---------------------------------------------------------------------------
# Parameter init (deterministic, PyTorch-Linear-style uniform bounds)
# ---------------------------------------------------------------------------
def init_params(key):
    ins = [IN_DIM + HALF_DIM * 2] + H_DIMS              # [34, 512, 512, 512, 512]
    outs = H_DIMS + [OUT_DIM]                           # [512, 512, 512, 512, 2]
    params = []
    for din, dout in zip(ins, outs):
        key, kw, kb = jax.random.split(key, 3)
        bound = 1.0 / math.sqrt(din)
        w = jax.random.uniform(kw, (din, dout), jnp.float32, -bound, bound)
        b = jax.random.uniform(kb, (dout,), jnp.float32, -bound, bound)
        params.append((w, b))
    # final `self.out = nn.Sequential(nn.Linear(out_dim, out_dim))`
    key, kw, kb = jax.random.split(key, 3)
    bound = 1.0 / math.sqrt(OUT_DIM)
    w = jax.random.uniform(kw, (OUT_DIM, OUT_DIM), jnp.float32, -bound, bound)
    b = jax.random.uniform(kb, (OUT_DIM,), jnp.float32, -bound, bound)
    params.append((w, b))
    return params


def cast_params(params, dtype):
    return [(w.astype(dtype), b.astype(dtype)) for w, b in params]


def t_embeddings_base():
    emb = math.log(10000.0) / (HALF_DIM - 1)
    return jnp.exp(jnp.arange(HALF_DIM, dtype=jnp.float32) * -emb)


# ---------------------------------------------------------------------------
# Pure-JAX reference mirroring the kernel's numerics exactly:
# bf16 weights, bf16 LHS on the wide MXU contractions, f32 VPU for K=2 parts.
# (Both kernel and reference differ from an f32 PyTorch Net only by the bf16
#  weight/activation quantization, ~1e-3 relative.)
# ---------------------------------------------------------------------------
def net_forward_ref(params, x, t, base):
    f32, bf16 = jnp.float32, jnp.bfloat16
    (w0, b0), *mid, (w5, b5) = params
    emb = t[:, None] * base[None, :]
    sc = jnp.concatenate([jnp.sin(emb), jnp.cos(emb)], axis=-1)   # (B, 32)
    h = jnp.dot(sc.astype(bf16), w0[IN_DIM:], preferred_element_type=f32)
    h = h + b0.astype(f32) + x @ w0[:IN_DIM].astype(f32)
    h = _leaky(h)
    for w, b in mid:
        h = jnp.dot(h.astype(bf16), w, preferred_element_type=f32)
        h = _leaky(h + b.astype(f32))
    return h @ w5.astype(f32) + b5.astype(f32)


if __name__ == "__main__":
    key = jax.random.PRNGKey(0)
    kx, kt, kp = jax.random.split(key, 3)

    B = 8
    x = jax.random.normal(kx, (B, IN_DIM), dtype=jnp.float32)
    t = jax.random.uniform(kt, (B,), dtype=jnp.float32, minval=0.0, maxval=100.0)

    params = cast_params(init_params(kp), WEIGHT_DTYPE)
    base = t_embeddings_base()

    net_forward = jax.jit(net_forward_pallas)
    out = jax.block_until_ready(net_forward(params, x, t, base))

    ref = net_forward_ref(params, x, t, base)
    assert out.shape == (B, OUT_DIM), out.shape
    assert jnp.allclose(out, ref, rtol=1e-3, atol=1e-3), (
        float(jnp.max(jnp.abs(out - ref)))
    )
    print("KERNEL_OK")
</pallas_src>

<mosaic_0001>
module attributes {stable_mosaic.version = 11 : i64} {
  func.func @_fused_net_kernel(%arg0: i32, %arg1: memref<8x2xf32, #tpu.memory_space<vmem>>, %arg2: memref<8x1xf32, #tpu.memory_space<vmem>>, %arg3: memref<1x32xf32, #tpu.memory_space<vmem>>, %arg4: memref<2x512xbf16, #tpu.memory_space<vmem>>, %arg5: memref<32x512xbf16, #tpu.memory_space<vmem>>, %arg6: memref<1x512xbf16, #tpu.memory_space<vmem>>, %arg7: memref<512x512xbf16, #tpu.memory_space<vmem>>, %arg8: memref<1x512xbf16, #tpu.memory_space<vmem>>, %arg9: memref<512x512xbf16, #tpu.memory_space<vmem>>, %arg10: memref<1x512xbf16, #tpu.memory_space<vmem>>, %arg11: memref<512x512xbf16, #tpu.memory_space<vmem>>, %arg12: memref<1x512xbf16, #tpu.memory_space<vmem>>, %arg13: memref<512x2xbf16, #tpu.memory_space<vmem>>, %arg14: memref<1x2xbf16, #tpu.memory_space<vmem>>, %arg15: memref<2x2xbf16, #tpu.memory_space<vmem>>, %arg16: memref<1x2xbf16, #tpu.memory_space<vmem>>, %arg17: memref<8x2xf32, #tpu.memory_space<vmem>>) attributes {dimension_semantics = [#tpu.dimension_semantics<parallel>], iteration_bounds = array<i64: 1>, scalar_prefetch = 0 : i64, scratch_operands = 0 : i64, tpu.core_type = #tpu.core_type<tc>, window_params = [{transform_indices = @transform_0, window_bounds = array<i64: 8, 2>}, {transform_indices = @transform_1, window_bounds = array<i64: 8, 1>}, {pipeline_mode = #tpu.pipeline_mode<synchronous>, transform_indices = @transform_2, window_bounds = array<i64: 1, 32>}, {pipeline_mode = #tpu.pipeline_mode<synchronous>, transform_indices = @transform_3, window_bounds = array<i64: 2, 512>}, {pipeline_mode = #tpu.pipeline_mode<synchronous>, transform_indices = @transform_4, window_bounds = array<i64: 32, 512>}, {pipeline_mode = #tpu.pipeline_mode<synchronous>, transform_indices = @transform_5, window_bounds = array<i64: 1, 512>}, {pipeline_mode = #tpu.pipeline_mode<synchronous>, transform_indices = @transform_6, window_bounds = array<i64: 512, 512>}, {pipeline_mode = #tpu.pipeline_mode<synchronous>, transform_indices = @transform_7, window_bounds = array<i64: 1, 512>}, {pipeline_mode = #tpu.pipeline_mode<synchronous>, transform_indices = @transform_8, window_bounds = array<i64: 512, 512>}, {pipeline_mode = #tpu.pipeline_mode<synchronous>, transform_indices = @transform_9, window_bounds = array<i64: 1, 512>}, {pipeline_mode = #tpu.pipeline_mode<synchronous>, transform_indices = @transform_10, window_bounds = array<i64: 512, 512>}, {pipeline_mode = #tpu.pipeline_mode<synchronous>, transform_indices = @transform_11, window_bounds = array<i64: 1, 512>}, {pipeline_mode = #tpu.pipeline_mode<synchronous>, transform_indices = @transform_12, window_bounds = array<i64: 512, 2>}, {pipeline_mode = #tpu.pipeline_mode<synchronous>, transform_indices = @transform_13, window_bounds = array<i64: 1, 2>}, {pipeline_mode = #tpu.pipeline_mode<synchronous>, transform_indices = @transform_14, window_bounds = array<i64: 2, 2>}, {pipeline_mode = #tpu.pipeline_mode<synchronous>, transform_indices = @transform_15, window_bounds = array<i64: 1, 2>}, {transform_indices = @transform_16, window_bounds = array<i64: 8, 2>}]} {
    %c0 = arith.constant 0 : index
    %c0_0 = arith.constant 0 : index
    %0 = vector.load %arg1[%c0, %c0_0] : memref<8x2xf32, #tpu.memory_space<vmem>>, vector<8x2xf32>
    %c0_1 = arith.constant 0 : index
    %c0_2 = arith.constant 0 : index
    %1 = vector.load %arg2[%c0_1, %c0_2] : memref<8x1xf32, #tpu.memory_space<vmem>>, vector<8x1xf32>
    %c0_3 = arith.constant 0 : index
    %c0_4 = arith.constant 0 : index
    %2 = vector.load %arg3[%c0_3, %c0_4] : memref<1x32xf32, #tpu.memory_space<vmem>>, vector<1x32xf32>
    %3 = vector.broadcast %1 : vector<8x1xf32> to vector<8x32xf32>
    %4 = vector.broadcast %2 : vector<1x32xf32> to vector<8x32xf32>
    %5 = arith.mulf %3, %4 : vector<8x32xf32>
    %6 = tpu.iota {dimensions = array<i32: 1>} : vector<8x32xi32>
    %c16_i32 = arith.constant 16 : i32
    %7 = vector.broadcast %c16_i32 : i32 to vector<8x32xi32>
    %8 = arith.cmpi slt, %6, %7 : vector<8x32xi32>
    %9 = math.sin %5 : vector<8x32xf32>
    %10 = math.cos %5 : vector<8x32xf32>
    %11 = arith.select %8, %9, %10 : vector<8x32xi1>, vector<8x32xf32>
    %12 = arith.truncf %11 : vector<8x32xf32> to vector<8x32xbf16>
    %c0_5 = arith.constant 0 : index
    %c0_6 = arith.constant 0 : index
    %13 = vector.load %arg5[%c0_5, %c0_6] : memref<32x512xbf16, #tpu.memory_space<vmem>>, vector<32x512xbf16>
    %cst = arith.constant dense<0.000000e+00> : vector<8x512xf32>
    %14 = tpu.matmul %12, %13, %cst {dimension_numbers = #tpu.dot_dimension_numbers<[1], [0], [0], [1], [0, 0, 1, 1], [], []>} : vector<8x32xbf16>, vector<32x512xbf16>, vector<8x512xf32> -> vector<8x512xf32>
    %c0_7 = arith.constant 0 : index
    %c0_8 = arith.constant 0 : index
    %15 = vector.load %arg6[%c0_7, %c0_8] : memref<1x512xbf16, #tpu.memory_space<vmem>>, vector<1x512xbf16>
    %16 = arith.extf %15 : vector<1x512xbf16> to vector<1x512xf32>
    %17 = vector.broadcast %16 : vector<1x512xf32> to vector<8x512xf32>
    %18 = arith.addf %14, %17 : vector<8x512xf32>
    %c0_9 = arith.constant 0 : index
    %c0_10 = arith.constant 0 : index
    %19 = vector.load %arg4[%c0_9, %c0_10] : memref<2x512xbf16, #tpu.memory_space<vmem>>, vector<2x512xbf16>
    %20 = arith.extf %19 : vector<2x512xbf16> to vector<2x512xf32>
    %21 = vector.extract_strided_slice %0 {offsets = [0, 0], sizes = [8, 1], strides = [1, 1]} : vector<8x2xf32> to vector<8x1xf32>
    %22 = vector.extract_strided_slice %20 {offsets = [0, 0], sizes = [1, 512], strides = [1, 1]} : vector<2x512xf32> to vector<1x512xf32>
    %23 = vector.broadcast %21 : vector<8x1xf32> to vector<8x512xf32>
    %24 = vector.broadcast %22 : vector<1x512xf32> to vector<8x512xf32>
    %25 = arith.mulf %23, %24 : vector<8x512xf32>
    %26 = arith.addf %18, %25 : vector<8x512xf32>
    %27 = vector.extract_strided_slice %0 {offsets = [0, 1], sizes = [8, 1], strides = [1, 1]} : vector<8x2xf32> to vector<8x1xf32>
    %28 = vector.extract_strided_slice %20 {offsets = [1, 0], sizes = [1, 512], strides = [1, 1]} : vector<2x512xf32> to vector<1x512xf32>
    %29 = vector.broadcast %27 : vector<8x1xf32> to vector<8x512xf32>
    %30 = vector.broadcast %28 : vector<1x512xf32> to vector<8x512xf32>
    %31 = arith.mulf %29, %30 : vector<8x512xf32>
    %32 = arith.addf %26, %31 : vector<8x512xf32>
    %cst_11 = arith.constant 0.000000e+00 : f32
    %33 = vector.broadcast %cst_11 : f32 to vector<8x512xf32>
    %34 = arith.cmpf ogt, %32, %33 : vector<8x512xf32>
    %cst_12 = arith.constant 0.00999999977 : f32
    %35 = vector.broadcast %cst_12 : f32 to vector<8x512xf32>
    %36 = arith.mulf %35, %32 : vector<8x512xf32>
    %37 = arith.select %34, %32, %36 : vector<8x512xi1>, vector<8x512xf32>
    %38 = arith.truncf %37 : vector<8x512xf32> to vector<8x512xbf16>
    %c0_13 = arith.constant 0 : index
    %c0_14 = arith.constant 0 : index
    %39 = vector.load %arg7[%c0_13, %c0_14] : memref<512x512xbf16, #tpu.memory_space<vmem>>, vector<512x512xbf16>
    %cst_15 = arith.constant dense<0.000000e+00> : vector<8x512xf32>
    %40 = tpu.matmul %38, %39, %cst_15 {dimension_numbers = #tpu.dot_dimension_numbers<[1], [0], [0], [1], [0, 0, 1, 1], [], []>} : vector<8x512xbf16>, vector<512x512xbf16>, vector<8x512xf32> -> vector<8x512xf32>
    %c0_16 = arith.constant 0 : index
    %c0_17 = arith.constant 0 : index
    %41 = vector.load %arg8[%c0_16, %c0_17] : memref<1x512xbf16, #tpu.memory_space<vmem>>, vector<1x512xbf16>
    %42 = arith.extf %41 : vector<1x512xbf16> to vector<1x512xf32>
    %43 = vector.broadcast %42 : vector<1x512xf32> to vector<8x512xf32>
    %44 = arith.addf %40, %43 : vector<8x512xf32>
    %cst_18 = arith.constant 0.000000e+00 : f32
    %45 = vector.broadcast %cst_18 : f32 to vector<8x512xf32>
    %46 = arith.cmpf ogt, %44, %45 : vector<8x512xf32>
    %cst_19 = arith.constant 0.00999999977 : f32
    %47 = vector.broadcast %cst_19 : f32 to vector<8x512xf32>
    %48 = arith.mulf %47, %44 : vector<8x512xf32>
    %49 = arith.select %46, %44, %48 : vector<8x512xi1>, vector<8x512xf32>
    %50 = arith.truncf %49 : vector<8x512xf32> to vector<8x512xbf16>
    %c0_20 = arith.constant 0 : index
    %c0_21 = arith.constant 0 : index
    %51 = vector.load %arg9[%c0_20, %c0_21] : memref<512x512xbf16, #tpu.memory_space<vmem>>, vector<512x512xbf16>
    %cst_22 = arith.constant dense<0.000000e+00> : vector<8x512xf32>
    %52 = tpu.matmul %50, %51, %cst_22 {dimension_numbers = #tpu.dot_dimension_numbers<[1], [0], [0], [1], [0, 0, 1, 1], [], []>} : vector<8x512xbf16>, vector<512x512xbf16>, vector<8x512xf32> -> vector<8x512xf32>
    %c0_23 = arith.constant 0 : index
    %c0_24 = arith.constant 0 : index
    %53 = vector.load %arg10[%c0_23, %c0_24] : memref<1x512xbf16, #tpu.memory_space<vmem>>, vector<1x512xbf16>
    %54 = arith.extf %53 : vector<1x512xbf16> to vector<1x512xf32>
    %55 = vector.broadcast %54 : vector<1x512xf32> to vector<8x512xf32>
    %56 = arith.addf %52, %55 : vector<8x512xf32>
    %cst_25 = arith.constant 0.000000e+00 : f32
    %57 = vector.broadcast %cst_25 : f32 to vector<8x512xf32>
    %58 = arith.cmpf ogt, %56, %57 : vector<8x512xf32>
    %cst_26 = arith.constant 0.00999999977 : f32
    %59 = vector.broadcast %cst_26 : f32 to vector<8x512xf32>
    %60 = arith.mulf %59, %56 : vector<8x512xf32>
    %61 = arith.select %58, %56, %60 : vector<8x512xi1>, vector<8x512xf32>
    %62 = arith.truncf %61 : vector<8x512xf32> to vector<8x512xbf16>
    %c0_27 = arith.constant 0 : index
    %c0_28 = arith.constant 0 : index
    %63 = vector.load %arg11[%c0_27, %c0_28] : memref<512x512xbf16, #tpu.memory_space<vmem>>, vector<512x512xbf16>
    %cst_29 = arith.constant dense<0.000000e+00> : vector<8x512xf32>
    %64 = tpu.matmul %62, %63, %cst_29 {dimension_numbers = #tpu.dot_dimension_numbers<[1], [0], [0], [1], [0, 0, 1, 1], [], []>} : vector<8x512xbf16>, vector<512x512xbf16>, vector<8x512xf32> -> vector<8x512xf32>
    %c0_30 = arith.constant 0 : index
    %c0_31 = arith.constant 0 : index
    %65 = vector.load %arg12[%c0_30, %c0_31] : memref<1x512xbf16, #tpu.memory_space<vmem>>, vector<1x512xbf16>
    %66 = arith.extf %65 : vector<1x512xbf16> to vector<1x512xf32>
    %67 = vector.broadcast %66 : vector<1x512xf32> to vector<8x512xf32>
    %68 = arith.addf %64, %67 : vector<8x512xf32>
    %cst_32 = arith.constant 0.000000e+00 : f32
    %69 = vector.broadcast %cst_32 : f32 to vector<8x512xf32>
    %70 = arith.cmpf ogt, %68, %69 : vector<8x512xf32>
    %cst_33 = arith.constant 0.00999999977 : f32
    %71 = vector.broadcast %cst_33 : f32 to vector<8x512xf32>
    %72 = arith.mulf %71, %68 : vector<8x512xf32>
    %73 = arith.select %70, %68, %72 : vector<8x512xi1>, vector<8x512xf32>
    %74 = arith.truncf %73 : vector<8x512xf32> to vector<8x512xbf16>
    %c0_34 = arith.constant 0 : index
    %c0_35 = arith.constant 0 : index
    %75 = vector.load %arg13[%c0_34, %c0_35] : memref<512x2xbf16, #tpu.memory_space<vmem>>, vector<512x2xbf16>
    %cst_36 = arith.constant dense<0.000000e+00> : vector<8x2xf32>
    %76 = tpu.matmul %74, %75, %cst_36 {dimension_numbers = #tpu.dot_dimension_numbers<[1], [0], [0], [1], [0, 0, 1, 1], [], []>} : vector<8x512xbf16>, vector<512x2xbf16>, vector<8x2xf32> -> vector<8x2xf32>
    %c0_37 = arith.constant 0 : index
    %c0_38 = arith.constant 0 : index
    %77 = vector.load %arg14[%c0_37, %c0_38] : memref<1x2xbf16, #tpu.memory_space<vmem>>, vector<1x2xbf16>
    %78 = arith.extf %77 : vector<1x2xbf16> to vector<1x2xf32>
    %79 = vector.broadcast %78 : vector<1x2xf32> to vector<8x2xf32>
    %80 = arith.addf %76, %79 : vector<8x2xf32>
    %cst_39 = arith.constant 0.000000e+00 : f32
    %81 = vector.broadcast %cst_39 : f32 to vector<8x2xf32>
    %82 = arith.cmpf ogt, %80, %81 : vector<8x2xf32>
    %cst_40 = arith.constant 0.00999999977 : f32
    %83 = vector.broadcast %cst_40 : f32 to vector<8x2xf32>
    %84 = arith.mulf %83, %80 : vector<8x2xf32>
    %85 = arith.select %82, %80, %84 : vector<8x2xi1>, vector<8x2xf32>
    %c0_41 = arith.constant 0 : index
    %c0_42 = arith.constant 0 : index
    %86 = vector.load %arg15[%c0_41, %c0_42] : memref<2x2xbf16, #tpu.memory_space<vmem>>, vector<2x2xbf16>
    %87 = arith.extf %86 : vector<2x2xbf16> to vector<2x2xf32>
    %c0_43 = arith.constant 0 : index
    %c0_44 = arith.constant 0 : index
    %88 = vector.load %arg16[%c0_43, %c0_44] : memref<1x2xbf16, #tpu.memory_space<vmem>>, vector<1x2xbf16>
    %89 = arith.extf %88 : vector<1x2xbf16> to vector<1x2xf32>
    %90 = vector.extract_strided_slice %85 {offsets = [0, 0], sizes = [8, 1], strides = [1, 1]} : vector<8x2xf32> to vector<8x1xf32>
    %91 = vector.extract_strided_slice %87 {offsets = [0, 0], sizes = [1, 2], strides = [1, 1]} : vector<2x2xf32> to vector<1x2xf32>
    %92 = vector.broadcast %90 : vector<8x1xf32> to vector<8x2xf32>
    %93 = vector.broadcast %91 : vector<1x2xf32> to vector<8x2xf32>
    %94 = arith.mulf %92, %93 : vector<8x2xf32>
    %95 = vector.broadcast %89 : vector<1x2xf32> to vector<8x2xf32>
    %96 = arith.addf %95, %94 : vector<8x2xf32>
    %97 = vector.extract_strided_slice %85 {offsets = [0, 1], sizes = [8, 1], strides = [1, 1]} : vector<8x2xf32> to vector<8x1xf32>
    %98 = vector.extract_strided_slice %87 {offsets = [1, 0], sizes = [1, 2], strides = [1, 1]} : vector<2x2xf32> to vector<1x2xf32>
    %99 = vector.broadcast %97 : vector<8x1xf32> to vector<8x2xf32>
    %100 = vector.broadcast %98 : vector<1x2xf32> to vector<8x2xf32>
    %101 = arith.mulf %99, %100 : vector<8x2xf32>
    %102 = arith.addf %96, %101 : vector<8x2xf32>
    %c0_45 = arith.constant 0 : index
    %c0_46 = arith.constant 0 : index
    %103 = vector.load %arg17[%c0_45, %c0_46] : memref<8x2xf32, #tpu.memory_space<vmem>>, vector<8x2xf32>
    tpu.vector_store %arg17[%c0_45, %c0_46], %102 {strides = array<i32>} : memref<8x2xf32, #tpu.memory_space<vmem>>, vector<8x2xf32>,
    return
  }
  func.func @transform_0(%arg0: i32) -> (i32, i32) {
    %c0_i32 = arith.constant 0 : i32
    %c0_i32_0 = arith.constant 0 : i32
    return %arg0, %c0_i32 : i32, i32
  }
  func.func @transform_1(%arg0: i32) -> (i32, i32) {
    %c0_i32 = arith.constant 0 : i32
    %c0_i32_0 = arith.constant 0 : i32
    return %arg0, %c0_i32 : i32, i32
  }
  func.func @transform_2(%arg0: i32) -> (i32, i32) {
    %c0_i32 = arith.constant 0 : i32
    %c0_i32_0 = arith.constant 0 : i32
    %c0_i32_1 = arith.constant 0 : i32
    return %c0_i32, %c0_i32_0 : i32, i32
  }
  func.func @transform_3(%arg0: i32) -> (i32, i32) {
    %c0_i32 = arith.constant 0 : i32
    %c0_i32_0 = arith.constant 0 : i32
    %c0_i32_1 = arith.constant 0 : i32
    return %c0_i32, %c0_i32_0 : i32, i32
  }
  func.func @transform_4(%arg0: i32) -> (i32, i32) {
    %c0_i32 = arith.constant 0 : i32
    %c0_i32_0 = arith.constant 0 : i32
    %c0_i32_1 = arith.constant 0 : i32
    return %c0_i32, %c0_i32_0 : i32, i32
  }
  func.func @transform_5(%arg0: i32) -> (i32, i32) {
    %c0_i32 = arith.constant 0 : i32
    %c0_i32_0 = arith.constant 0 : i32
    %c0_i32_1 = arith.constant 0 : i32
    return %c0_i32, %c0_i32_0 : i32, i32
  }
  func.func @transform_6(%arg0: i32) -> (i32, i32) {
    %c0_i32 = arith.constant 0 : i32
    %c0_i32_0 = arith.constant 0 : i32
    %c0_i32_1 = arith.constant 0 : i32
    return %c0_i32, %c0_i32_0 : i32, i32
  }
  func.func @transform_7(%arg0: i32) -> (i32, i32) {
    %c0_i32 = arith.constant 0 : i32
    %c0_i32_0 = arith.constant 0 : i32
    %c0_i32_1 = arith.constant 0 : i32
    return %c0_i32, %c0_i32_0 : i32, i32
  }
  func.func @transform_8(%arg0: i32) -> (i32, i32) {
    %c0_i32 = arith.constant 0 : i32
    %c0_i32_0 = arith.constant 0 : i32
    %c0_i32_1 = arith.constant 0 : i32
    return %c0_i32, %c0_i32_0 : i32, i32
  }
  func.func @transform_9(%arg0: i32) -> (i32, i32) {
    %c0_i32 = arith.constant 0 : i32
    %c0_i32_0 = arith.constant 0 : i32
    %c0_i32_1 = arith.constant 0 : i32
    return %c0_i32, %c0_i32_0 : i32, i32
  }
  func.func @transform_10(%arg0: i32) -> (i32, i32) {
    %c0_i32 = arith.constant 0 : i32
    %c0_i32_0 = arith.constant 0 : i32
    %c0_i32_1 = arith.constant 0 : i32
    return %c0_i32, %c0_i32_0 : i32, i32
  }
  func.func @transform_11(%arg0: i32) -> (i32, i32) {
    %c0_i32 = arith.constant 0 : i32
    %c0_i32_0 = arith.constant 0 : i32
    %c0_i32_1 = arith.constant 0 : i32
    return %c0_i32, %c0_i32_0 : i32, i32
  }
  func.func @transform_12(%arg0: i32) -> (i32, i32) {
    %c0_i32 = arith.constant 0 : i32
    %c0_i32_0 = arith.constant 0 : i32
    %c0_i32_1 = arith.constant 0 : i32
    return %c0_i32, %c0_i32_0 : i32, i32
  }
  func.func @transform_13(%arg0: i32) -> (i32, i32) {
    %c0_i32 = arith.constant 0 : i32
    %c0_i32_0 = arith.constant 0 : i32
    %c0_i32_1 = arith.constant 0 : i32
    return %c0_i32, %c0_i32_0 : i32, i32
  }
  func.func @transform_14(%arg0: i32) -> (i32, i32) {
    %c0_i32 = arith.constant 0 : i32
    %c0_i32_0 = arith.constant 0 : i32
    %c0_i32_1 = arith.constant 0 : i32
    return %c0_i32, %c0_i32_0 : i32, i32
  }
  func.func @transform_15(%arg0: i32) -> (i32, i32) {
    %c0_i32 = arith.constant 0 : i32
    %c0_i32_0 = arith.constant 0 : i32
    %c0_i32_1 = arith.constant 0 : i32
    return %c0_i32, %c0_i32_0 : i32, i32
  }
  func.func @transform_16(%arg0: i32) -> (i32, i32) {
    %c0_i32 = arith.constant 0 : i32
    %c0_i32_0 = arith.constant 0 : i32
    return %arg0, %c0_i32 : i32, i32
  }
}

</mosaic_0001>

<bundles_post_ra>
// kernel: net_forward_pallas.1
= control target key start
LH: loop header
LB: loop body
LE: loop exit
PB: predicated region body
PF: predicated region fallthrough
CT: control target
= control target key end

     0   :  { %s5530_s0 = inlined_call_operand.vmem [shape: f32[8,2], index: 0, kind: input, shape index: {}]   ;;  %s5531_s1 = inlined_call_operand.vmem [shape: f32[8,1], index: 1, kind: input, shape index: {}]   ;;  %s5532_s2 = inlined_call_operand.vmem [shape: f32[1,32], index: 2, kind: input, shape index: {}]   ;;  %s5533_s3 = inlined_call_operand.vmem [shape: bf16[2,512], index: 3, kind: input, shape index: {}]   ;;  %s5534_s4 = inlined_call_operand.vmem [shape: bf16[32,512], index: 4, kind: input, shape index: {}]   ;;  %s5535_s5 = inlined_call_operand.vmem [shape: bf16[1,512], index: 5, kind: input, shape index: {}]   ;;  %s5536_s6 = inlined_call_operand.hbm [shape: bf16[512,512], index: 6, kind: input, shape index: {}]   ;;  %s5537_s7 = inlined_call_operand.vmem [shape: bf16[1,512], index: 7, kind: input, shape index: {}]   ;;  %s5538_s8 = inlined_call_operand.hbm [shape: bf16[512,512], index: 8, kind: input, shape index: {}]   ;;  %s5539_s9 = inlined_call_operand.vmem [shape: bf16[1,512], index: 9, kind: input, shape index: {}]   ;;  %s5540_s10 = inlined_call_operand.hbm [shape: bf16[512,512], index: 10, kind: input, shape index: {}]   ;;  %s5541_s11 = inlined_call_operand.vmem [shape: bf16[1,512], index: 11, kind: input, shape index: {}]   ;;  %s5542_s12 = inlined_call_operand.vmem [shape: bf16[512,2], index: 12, kind: input, shape index: {}]   ;;  %s5543_s13 = inlined_call_operand.vmem [shape: bf16[1,2], index: 13, kind: input, shape index: {}]   ;;  %s5544_s14 = inlined_call_operand.vmem [shape: bf16[2,2], index: 14, kind: input, shape index: {}]   ;;  %s5545_s15 = inlined_call_operand.vmem [shape: bf16[1,2], index: 15, kind: input, shape index: {}]   ;;  %s5546_s16 = inlined_call_operand.vmem [shape: f32[8,2], index: 16, kind: output, shape index: {}]  }
   0x1   :  { %5547 = sst [smem:[#allocation9_spill]] %s5530_s0 }
   0x2   :  { %21 = vsyncpa [#allocation3], 0 }
   0x3   :  { %22 = vsyncpa [#allocation5], 0  ;;  %s5142_s21 = smov [#allocation4]   ;;  %s5143_s23 = smov [#allocation2]  }
   0x4   :  { %s54_s22 = sshll.u32 %s5142_s21, 4  ;;  %s40_s24 = sshll.u32 %s5143_s23, 4  ;;  %s55_s22 = int_to_ptr.vmem [resolvable:$true] %s54_s22  ;;  %s41_s24 = int_to_ptr.vmem [resolvable:$true] %s40_s24 }
   0x5   :  { %s5086_s25 = scalar_lea.vmem %s55_s22, 16384  ;;  %p5091_p1 = scmp.lt.s32.totalorder %s55_s22, %s55_s22 }
   0x6   :  { %p5087_p0 = scmp.ne.s32.totalorder %s55_s22, %s5086_s25  ;;  %p5092_p2 = scmp.lt.s32.totalorder %s5086_s25, %s5086_s25 }
   0x8   :  { %p5093_p3 = por %p5092_p2, %p5091_p1 }
   0xa   :  { %p5094_p4 = pnand %p5093_p3, %p5087_p0 }
   0xc   :  { %5097 = shalt.err (!%p5094_p4)
}
   0xd   :  { %s5144_s26 = smov 256   ;;  %s5145_s27 = smov 16  }
   0xe   :  { %60 = dma.hbm_to_vmem [thread:$0]  %s5538_s8, 16384, %s55_s22, [#allocation5], %s5144_s26, %s5144_s26, %s5145_s27  }
   0xf   :  { %s5106_s30 = scalar_lea.vmem %s41_s24, 16384  ;;  %p5111_p6 = scmp.lt.s32.totalorder %s41_s24, %s41_s24 }
  0x10   :  { %p5107_p5 = scmp.ne.s32.totalorder %s41_s24, %s5106_s30  ;;  %p5112_p7 = scmp.lt.s32.totalorder %s5106_s30, %s5106_s30 }
  0x12   :  { %p5113_p8 = por %p5112_p7, %p5111_p6 }
  0x14   :  { %p5114_p9 = pnand %p5113_p8, %p5107_p5 }
  0x16   :  { %5117 = shalt.err (!%p5114_p9)
}
  0x17   :  { %46 = dma.hbm_to_vmem [thread:$0]  %s5536_s6, 16384, %s41_s24, [#allocation3], %s5144_s26, %s5144_s26, %s5145_s27  }
  0x18   :  { %s5146_s18 = smov [#allocation6]  }
  0x19   :  { %s68_s19 = sshll.u32 %s5146_s18, 4  ;;  %s69_s19 = int_to_ptr.vmem [resolvable:$true] %s68_s19 }
  0x1a   :  { %s5126_s20 = scalar_lea.vmem %s69_s19, 16384  ;;  %p5131_p11 = scmp.lt.s32.totalorder %s69_s19, %s69_s19 }
  0x1b   :  { %p5127_p10 = scmp.ne.s32.totalorder %s69_s19, %s5126_s20  ;;  %p5132_p12 = scmp.lt.s32.totalorder %s5126_s20, %s5126_s20 }
  0x1d   :  { %p5133_p13 = por %p5132_p12, %p5131_p11 }
  0x1f   :  { %p5134_p0 = pnand %p5133_p13, %p5127_p10 }
  0x21   :  { %5137 = shalt.err (!%p5134_p0)
}
  0x22   :  { %74 = dma.hbm_to_vmem [thread:$0]  %s5540_s10, 16384, %s69_s19, [#allocation5], %s5144_s26, %s5144_s26, %s5145_s27  }
  0x23   :  { %5138 = dma.done.wait [#allocation3], 16384  }
  0x24   :  { %5139 = vsyncadd [#allocation3], 4294950912 }
  0x25   :  { %5140 = dma.done.wait [#allocation5], 32768  }
  0x26   :  { %5141 = vsyncadd [#allocation5], 4294934528  ;;  %v5147_v0 = vmov 0   ;;  %v96_v1 = vld [vmem:[%s5531_s1] sm:$0xff]  ;;  %s5548_s25 = sld [smem:[#allocation9_spill]]  ;;  %v5148_v12 = vmov 1  }
  0x27   :  { %4450 = vset.pattern.permute.xlu0 %v5147_v0  ;;  %445 = vmatprep.mubr.bf16.mxu0 %v5147_v0  ;;  %v4454_v3 = vld [vmem:[%s5534_s4 + $0x24] ss:$16 sps:$4 sm:$0xff]   ;;  %v4456_v4 = vld [vmem:[%s5534_s4 + $0x2c] ss:$16 sps:$4 sm:$0xff]   ;;  %v4458_v5 = vld [vmem:[%s5534_s4 + $0x20] ss:$16 sps:$4 sm:$0xff]  }
  0x28   :  { %486 = vmatprep.mubr.bf16.mxu1 %v5147_v0  ;;  %100 = vperm.xlu0 %4450, %v96_v1   ;;  %v4459_v6 = vld [vmem:[%s5534_s4 + $0x28] ss:$16 sps:$4 sm:$0xff]   ;;  %v4460_v7 = vld [vmem:[%s5534_s4 + $0x4] ss:$16 sps:$4 sm:$0xff]   ;;  %v4462_v8 = vld [vmem:[%s5534_s4 + $0xc] ss:$16 sps:$4 sm:$0xff]  }
  0x29   :  { %425 = vmatprep.subr.bf16.mxu0 %v4454_v3  ;;  %466 = vmatprep.subr.bf16.mxu1 %v4456_v4  ;;  %v4464_v9 = vld [vmem:[%s5534_s4] ss:$16 sps:$4 sm:$0xff]   ;;  %v4465_v10 = vld [vmem:[%s5534_s4 + $0x8] ss:$16 sps:$4 sm:$0xff]   ;;  %v4468_v11 = vld [vmem:[#allocation2 + $0xe4] ss:$16 sps:$4 sm:$0xff]  }
  0x2a   :  { %426 = vmatpush1.bf16.msra.mxu0 %v4458_v5  ;;  %467 = vmatpush1.bf16.msra.mxu1 %v4459_v6  ;;  %v4471_v13 = vld [vmem:[#allocation2 + $0x2e4] ss:$16 sps:$4 sm:$0xff]   ;;  %v3954_v14 = vld [vmem:[%s5532_s2] ss:$0 sm:$0xff]  ;;  %v5149_v27 = vmov 683565275  }
  0x2b   :  { %427 = vmatprep.subr.bf16.mxu0 %v4460_v7  ;;  %468 = vmatprep.subr.bf16.mxu1 %v4462_v8  ;;  %v5150_v29 = vmov 2475754826   ;;  %v5151_v32 = vmov 2131351028   ;;  %v5152_v35 = vmov 2102212464  }
  0x2c   :  { %v95_v2 = vld [vmem:[%s5548_s25] sm:$0xff]  ;;  %4451 = vset.pattern.permute.xlu1 %v5148_v12  ;;  %v5153_v38 = vmov 920167782   ;;  %v5154_v41 = vmov 1326507024  }
  0x2d   :  { %499 = vperm.xlu0 %4450, %v95_v2   ;;  %548 = vperm.xlu1 %4451, %v95_v2  }
  0x2e   :  { %428 = vmatpush1.bf16.msra.mxu0 %v4464_v9  ;;  %469 = vmatpush1.bf16.msra.mxu1 %v4465_v10 }
  0x2f   :  { %1418 = vmatprep.subr.bf16.mxu0 %v4468_v11  ;;  %1459 = vmatprep.subr.bf16.mxu1 %v4471_v13 }
  0x31   :  { %4453 = vset.pattern.permute.xlu0 %v5148_v12  ;;  %4452 = vset.pattern.permute.xlu1 %v5147_v0 }
  0xa3   :  { %v101_v15 = vpop.permute.xlu0 %100 }
  0xa4   :  { %v5282_v16 = vmul.f32 %v3954_v14, %v101_v15 }
  0xa6   :  { %v116_v17 = vand.u32 2139095040, %v5282_v16  ;;  %v113_v21 = vand.u32 2147483647, %v5282_v16  ;;  %vm115_vm7 = vcmp.lt.s32.totalorder %v5282_v16, 0 }
  0xa8   :  { %v117_v18 = vshrl.u32 %v116_v17, 23  ;;  %v120_v24 = vand.u32 8388607, %v113_v21  ;;  %vm114_vm8 = vcmp.le.f32.partialorder %v113_v21, 0.7853982 }
  0xaa   :  { %v3955_v19 = vadd.s32 4294967169, %v117_v18  ;;  %v121_v43 = vor.u32 8388608, %v120_v24 }
  0xac   :  { %v123_v20 = vadd.s32 1, %v3955_v19  ;;  %v161_v57 = vshll.u32 %v121_v43, 8 }
  0xae   :  { %vm124_vm0 = vcmp.gt.s32.totalorder %v123_v20, 0 }
  0xaf   :  { %v125_v22 = vsel %vm124_vm0, %v123_v20, 0  ;;  %vm205_vm0 = vweird.f32 %v5282_v16 }
  0xb0   :  { %v127_v23 = vand.u32 31, %v125_v22  ;;  %v126_v26 = vshrl.u32 %v125_v22, 5 }
  0xb2   :  { %v128_v25 = vsub.s32 32, %v127_v23  ;;  %v130_v28 = vshll.u32 %v5149_v27, %v127_v23  ;;  %v133_v30 = vshll.u32 %v5150_v29, %v127_v23  ;;  %v136_v34 = vshll.u32 %v5151_v32, %v127_v23 }
  0xb3   :  { %v139_v37 = vshll.u32 %v5152_v35, %v127_v23  ;;  %v142_v40 = vshll.u32 %v5153_v38, %v127_v23  ;;  %vm145_vm1 = vcmp.lt.s32.totalorder %v126_v26, 1  ;;  %vm148_vm2 = vcmp.lt.s32.totalorder %v126_v26, 4 }
  0xb4   :  { %v131_v31 = vshrl.u32 %v5150_v29, %v128_v25  ;;  %v134_v33 = vshrl.u32 %v5151_v32, %v128_v25  ;;  %v137_v36 = vshrl.u32 %v5152_v35, %v128_v25  ;;  %v140_v39 = vshrl.u32 %v5153_v38, %v128_v25 }
  0xb5   :  { %v143_v42 = vshrl.u32 %v5154_v41, %v128_v25  ;;  %vm147_vm3 = vcmp.lt.s32.totalorder %v126_v26, 3  ;;  %v129_v52 = vshrl.u32 %v5149_v27, %v128_v25  ;;  %vm146_vm4 = vcmp.lt.s32.totalorder %v126_v26, 2 }
  0xb6   :  { %v132_v44 = vor.u32 %v131_v31, %v130_v28  ;;  %v135_v45 = vor.u32 %v134_v33, %v133_v30  ;;  %v138_v46 = vor.u32 %v137_v36, %v136_v34  ;;  %v141_v47 = vor.u32 %v140_v39, %v139_v37 }
  0xb7   :  { %v144_v48 = vor.u32 %v143_v42, %v142_v40  ;;  %v110_v37 = vlaneseq }
  0xb8   :  { %v150_v49 = vsel %vm148_vm2, %v138_v46, 2102212464  ;;  %v153_v50 = vsel %vm145_vm1, %v132_v44, %v135_v45  ;;  %v157_v51 = vsel %vm145_vm1, %v135_v45, %v138_v46  ;;  %v154_v53 = vsel %vm148_vm2, %v141_v47, 920167782 }
  0xb9   :  { %v158_v54 = vsel %vm148_vm2, %v144_v48, 1326507024  ;;  %v155_v55 = vsel %vm147_vm3, %v138_v46, %v154_v53  ;;  %v149_v58 = vsel %vm145_vm1, %v129_v52, %v132_v44  ;;  %v151_v59 = vsel %vm147_vm3, %v135_v45, %v150_v49  ;;  %v4466_v53 = vld [vmem:[#allocation2 + $0xe0] ss:$16 sps:$4 sm:$0xff]  }
  0xba   :  { %v159_v56 = vsel %vm147_vm3, %v141_v47, %v158_v54  ;;  %v156_v60 = vsel %vm146_vm4, %v153_v50, %v155_v55  ;;  %v152_v2 = vsel %vm146_vm4, %v149_v58, %v151_v59  ;;  %v111_v40 = vand.u32 127, %v110_v37  ;;  %v4469_v54 = vld [vmem:[#allocation2 + $0x2e0] ss:$16 sps:$4 sm:$0xff]  }
  0xbb   :  { %v160_v61 = vsel %vm146_vm4, %v157_v51, %v159_v56  ;;  %v5291_v0 = vmul.u32.u64.low %v161_v57, %v156_v60  ;;  %v5292_v1 = vmul.u32.u64.high %v161_v57, %v156_v60, %v5291_v0  ;;  %v168_v4 = vmul.u32 %v161_v57, %v152_v2  ;;  %v4474_v56 = vld [vmem:[#allocation2 + $0xc4] ss:$16 sps:$4 sm:$0xff]   ;;  %v4472_v58 = vld [vmem:[#allocation2 + $0xc0] ss:$16 sps:$4 sm:$0xff]  }
  0xbc   :  { %v5288_v62 = vmul.u32.u64.low %v161_v57, %v160_v61  ;;  %v5289_v63 = vmul.u32.u64.high %v161_v57, %v160_v61, %v5288_v62  ;;  %vm112_vm9 = vcmp.lt.s32.totalorder %v111_v40, 16  ;;  %vm409_vm1 = vcmask 261120   ;;  %v4477_v57 = vld [vmem:[#allocation2 + $0x2c4] ss:$16 sps:$4 sm:$0xff]   ;;  %v4475_v59 = vld [vmem:[#allocation2 + $0x2c0] ss:$16 sps:$4 sm:$0xff]  }
  0xbd   :  { %v171_v3 = vadd.s32 1, %v5292_v1  ;;  %v4483_v60 = vld [vmem:[#allocation2 + $0x2a4] ss:$16 sps:$4 sm:$0xff]   ;;  %v4478_v61 = vld [vmem:[#allocation2 + $0xa0] ss:$16 sps:$4 sm:$0xff]  }
  0xbe   :  { %vm170_vm5 = vc.u32 %v5289_v63, %v5291_v0  ;;  %v169_v17 = vadd.s32 %v5291_v0, %v5289_v63  ;;  %v4481_v62 = vld [vmem:[#allocation2 + $0x2a0] ss:$16 sps:$4 sm:$0xff]   ;;  %v4486_v63 = vld [vmem:[#allocation2 + $0x84] ss:$16 sps:$4 sm:$0xff]  }
  0xbf   :  { %v172_v5 = vsel %vm170_vm5, %v171_v3, %v5292_v1  ;;  %v4489_v0 = vld [vmem:[#allocation2 + $0x284] ss:$16 sps:$4 sm:$0xff]   ;;  %v4484_v1 = vld [vmem:[#allocation2 + $0x80] ss:$16 sps:$4 sm:$0xff]  }
  0xc0   :  { %v173_v6 = vadd.s32 %v172_v5, %v168_v4  ;;  %v4487_v2 = vld [vmem:[#allocation2 + $0x280] ss:$16 sps:$4 sm:$0xff]   ;;  %v4492_v3 = vld [vmem:[#allocation2 + $0x64] ss:$16 sps:$4 sm:$0xff]  }
  0xc1   :  { %v4495_v4 = vld [vmem:[#allocation2 + $0x264] ss:$16 sps:$4 sm:$0xff]   ;;  %v4490_v5 = vld [vmem:[#allocation2 + $0x60] ss:$16 sps:$4 sm:$0xff]  }
  0xc2   :  { %v174_v7 = vadd.s32 536870912, %v173_v6  ;;  %v4538_v40 = vld [vmem:[#allocation2 + $0x160] ss:$16 sps:$4 sm:$0xff]  }
  0xc4   :  { %v175_v8 = vshrl.u32 %v174_v7, 30  ;;  %v4498_v7 = vld [vmem:[#allocation2 + $0x44] ss:$16 sps:$4 sm:$0xff]  }
  0xc6   :  { %v176_v9 = vshll.u32 %v175_v8, 30  ;;  %v199_v31 = vsub.s32 4, %v175_v8 }
  0xc8   :  { %v177_v10 = vsub.s32 %v173_v6, %v176_v9  ;;  %v200_v34 = vsel %vm115_vm7, %v199_v31, %v175_v8  ;;  %v4493_v6 = vld [vmem:[#allocation2 + $0x260] ss:$16 sps:$4 sm:$0xff]   ;;  %v4501_v8 = vld [vmem:[#allocation2 + $0x244] ss:$16 sps:$4 sm:$0xff]  }
  0xc9   :  { %v202_v35 = vsel %vm114_vm8, 0, %v200_v34  ;;  %v4496_v9 = vld [vmem:[#allocation2 + $0x40] ss:$16 sps:$4 sm:$0xff]   ;;  %v4537_v34 = vld [vmem:[#allocation2 + $0x384] ss:$16 sps:$4 sm:$0xff]  }
  0xca   :  { %v179_v11 = vsub.s32 0, %v177_v10  ;;  %v206_v36 = vadd.s32 3, %v202_v35  ;;  %v310_v39 = vand.u32 3, %v202_v35  ;;  %v4526_v31 = vld [vmem:[#allocation2 + $0x1a0] ss:$16 sps:$4 sm:$0xff]  }
  0xcb   :  { %v4532_v35 = vld [vmem:[#allocation2 + $0x180] ss:$16 sps:$4 sm:$0xff]  }
  0xcc   :  { %v3956_v12 = vmin.u32 %v179_v11, %v177_v10  ;;  %v207_v38 = vand.u32 3, %v206_v36  ;;  %vm315_vm11 = vcmp.eq.s32.totalorder %v310_v39, 2  ;;  %vm312_vm13 = vcmp.eq.s32.totalorder %v310_v39, 0  ;;  %v4504_v11 = vld [vmem:[#allocation2 + $0x24] ss:$16 sps:$4 sm:$0xff]  }
  0xcd   :  { %vm311_vm15 = vcmp.lt.s32.totalorder %v310_v39, 2  ;;  %v4535_v36 = vld [vmem:[#allocation2 + $0x380] ss:$16 sps:$4 sm:$0xff]   ;;  %v4543_v39 = vld [vmem:[#allocation2 + $0x364] ss:$16 sps:$4 sm:$0xff]  }
  0xce   :  { %v181_v13 = vclz %v3956_v12  ;;  %vm212_vm10 = vcmp.eq.s32.totalorder %v207_v38, 2  ;;  %vm209_vm12 = vcmp.eq.s32.totalorder %v207_v38, 0  ;;  %vm208_vm14 = vcmp.lt.s32.totalorder %v207_v38, 2  ;;  %v4507_v12 = vld [vmem:[#allocation2 + $0x224] ss:$16 sps:$4 sm:$0xff]  }
  0xcf   :  { %v4540_v38 = vld [vmem:[#allocation2 + $0x164] ss:$16 sps:$4 sm:$0xff]  }
  0xd0   :  { %v3957_v14 = vadd.s32 4294967294, %v181_v13  ;;  %v4502_v13 = vld [vmem:[#allocation2 + $0x20] ss:$16 sps:$4 sm:$0xff]  }
  0xd2   :  { %vm3958_vm6 = vcmp.lt.s32.totalorder %v3957_v14, 0 }
  0xd3   :  { %v184_v15 = vsel %vm3958_vm6, 0, %v3957_v14  ;;  %v4505_v14 = vld [vmem:[#allocation2 + $0x220] ss:$16 sps:$4 sm:$0xff]  }
  0xd4   :  { %v185_v18 = vsub.s32 32, %v184_v15  ;;  %v189_v19 = vsub.s32 4294967266, %v184_v15  ;;  %v186_v20 = vshll.u32 %v177_v10, %v184_v15  ;;  %v4499_v10 = vld [vmem:[#allocation2 + $0x240] ss:$16 sps:$4 sm:$0xff]   ;;  %v4510_v15 = vld [vmem:[#allocation2 + $0x4] ss:$16 sps:$4 sm:$0xff]  }
  0xd6   :  { %v187_v22 = vshrl.u32 %v169_v17, %v185_v18  ;;  %v190_v23 = vadd.s32 127, %v189_v19  ;;  %v4513_v17 = vld [vmem:[#allocation2 + $0x204] ss:$16 sps:$4 sm:$0xff]   ;;  %v4508_v18 = vld [vmem:[#allocation2] ss:$16 sps:$4 sm:$0xff]  }
  0xd7   :  { %v4511_v19 = vld [vmem:[#allocation2 + $0x200] ss:$16 sps:$4 sm:$0xff]  }
  0xd8   :  { %v188_v24 = vor.u32 %v187_v22, %v186_v20  ;;  %v191_v25 = vshll.u32 %v190_v23, 23  ;;  %v4516_v20 = vld [vmem:[#allocation2 + $0x1e4] ss:$16 sps:$4 sm:$0xff]   ;;  %v4514_v23 = vld [vmem:[#allocation2 + $0x1e0] ss:$16 sps:$4 sm:$0xff]  }
  0xd9   :  { %v4519_v22 = vld [vmem:[#allocation2 + $0x3e4] ss:$16 sps:$4 sm:$0xff]  }
  0xda   :  { %v192_v26 = vor.u32 4788187, %v191_v25  ;;  %v195_v28 = vcvt.s32.f32 %v188_v24  ;;  %v4517_v24 = vld [vmem:[#allocation2 + $0x3e0] ss:$16 sps:$4 sm:$0xff]   ;;  %v4522_v25 = vld [vmem:[#allocation2 + $0x1c4] ss:$16 sps:$4 sm:$0xff]  }
  0xdc   :  { %v193_v27 = vand.u32 2147483647, %v192_v26  ;;  %v4525_v26 = vld [vmem:[#allocation2 + $0x3c4] ss:$16 sps:$4 sm:$0xff]  }
  0xde   :  { %v196_v29 = vmul.f32 %v195_v28, %v193_v27  ;;  %v4520_v27 = vld [vmem:[#allocation2 + $0x1c0] ss:$16 sps:$4 sm:$0xff]  }
  0xdf   :  { %v4523_v28 = vld [vmem:[#allocation2 + $0x3c0] ss:$16 sps:$4 sm:$0xff]  }
  0xe0   :  { %v197_v30 = vxor.u32 2147483648, %v196_v29 }
  0xe2   :  { %v198_v32 = vsel %vm115_vm7, %v197_v30, %v196_v29  ;;  %v4528_v29 = vld [vmem:[#allocation2 + $0x1a4] ss:$16 sps:$4 sm:$0xff]  }
  0xe3   :  { %v201_v33 = vsel %vm114_vm8, %v5282_v16, %v198_v32  ;;  %v4480_v16 = vld [vmem:[#allocation2 + $0xa4] ss:$16 sps:$4 sm:$0xff]   ;;  %v4529_v32 = vld [vmem:[#allocation2 + $0x3a0] ss:$16 sps:$4 sm:$0xff]  }
  0xe4   :  { %5074 = vcosq.f32 %v201_v33  ;;  %v4531_v30 = vld [vmem:[#allocation2 + $0x3a4] ss:$16 sps:$4 sm:$0xff]  }
  0xe5   :  { %5076 = vsinq.f32 %v201_v33  ;;  %v4534_v33 = vld [vmem:[#allocation2 + $0x184] ss:$16 sps:$4 sm:$0xff]  }
  0xf1   :  { %v5075_v41 = vpop.eup %5074 }
  0xf2   :  { %v5077_v42 = vpop.eup %5076  ;;  %v213_v43 = vxor.u32 2147483648, %v5075_v41 }
  0xf3   :  { %v210_v44 = vxor.u32 2147483648, %v5077_v42 }
  0xf4   :  { %v214_v21 = vsel %vm212_vm10, %v213_v43, %v5077_v42  ;;  %v317_v45 = vsel %vm315_vm11, %v213_v43, %v5077_v42  ;;  %v4546_v42 = vld [vmem:[#allocation2 + $0x144] ss:$16 sps:$4 sm:$0xff]  }
  0xf5   :  { %v211_v46 = vsel %vm209_vm12, %v5075_v41, %v210_v44  ;;  %v314_v47 = vsel %vm312_vm13, %v5075_v41, %v210_v44  ;;  %v4541_v41 = vld [vmem:[#allocation2 + $0x360] ss:$16 sps:$4 sm:$0xff]   ;;  %v4549_v43 = vld [vmem:[#allocation2 + $0x344] ss:$16 sps:$4 sm:$0xff]  }
  0xf6   :  { %v215_v48 = vsel %vm208_vm14, %v211_v46, %v214_v21  ;;  %v318_v49 = vsel %vm311_vm15, %v314_v47, %v317_v45  ;;  %v4544_v44 = vld [vmem:[#allocation2 + $0x140] ss:$16 sps:$4 sm:$0xff]   ;;  %v4552_v45 = vld [vmem:[#allocation2 + $0x124] ss:$16 sps:$4 sm:$0xff]  }
  0xf7   :  { %v216_v50 = vsel %vm205_vm0, nan, %v215_v48  ;;  %v319_v51 = vsel %vm205_vm0, nan, %v318_v49  ;;  %v4547_v21 = vld [vmem:[#allocation2 + $0x340] ss:$16 sps:$4 sm:$0xff]   ;;  %v4555_v46 = vld [vmem:[#allocation2 + $0x324] ss:$16 sps:$4 sm:$0xff]  }
  0xf8   :  { %v320_v52 = vsel %vm112_vm9, %v216_v50, %v319_v51  ;;  %v4550_v47 = vld [vmem:[#allocation2 + $0x120] ss:$16 sps:$4 sm:$0xff]   ;;  %v4558_v49 = vld [vmem:[#allocation2 + $0x104] ss:$16 sps:$4 sm:$0xff]  }
  0xf9   :  { %v321_v55 = vpack.c.bf16 %v320_v52, %v320_v52  ;;  %v4553_v48 = vld [vmem:[#allocation2 + $0x320] ss:$16 sps:$4 sm:$0xff]   ;;  %v4561_v52 = vld [vmem:[#allocation2 + $0x304] ss:$16 sps:$4 sm:$0xff]  }
  0xfa   :  { %v4556_v50 = vld [vmem:[#allocation2 + $0x100] ss:$16 sps:$4 sm:$0xff]  }
  0xfb   :  { %3971 = vmatmul.mubr.msk.bf16.vlgmr.msra.gmra.mxu0 %vm409_vm1, %v321_v55  ;;  %3972 = vmatmul.mubr.msk.bf16.vlgmr.msra.gmra.mxu1 %vm409_vm1, %v321_v55  ;;  %v4559_v51 = vld [vmem:[#allocation2 + $0x300] ss:$16 sps:$4 sm:$0xff]   ;;  %v334_v55 = vshrl.u32 %v110_v37, 7 }
  0xfc   :  { %1419 = vmatpush1.bf16.msra.mxu0 %v4466_v53  ;;  %1460 = vmatpush1.bf16.msra.mxu1 %v4469_v54  ;;  %v4564_v53 = vld [vmem:[#allocation2 + $0xec] ss:$16 sps:$4 sm:$0xff]  }
  0xfd   :  { %1420 = vmatprep.subr.bf16.mxu0 %v4474_v56  ;;  %1461 = vmatprep.subr.bf16.mxu1 %v4477_v57  ;;  %v4567_v54 = vld [vmem:[#allocation2 + $0x2ec] ss:$16 sps:$4 sm:$0xff]   ;;  %v495_v56 = vld [vmem:[%s5533_s3] sm:$0xf]  ;;  %v5320_v37 = vsub.s32 6, %v334_v55 }
  0xfe   :  { %v330_v57 = vld [vmem:[%s5535_s5] sm:$0xf] }
 0x100   :  { %1421 = vmatpush1.bf16.msra.mxu0 %v4472_v58  ;;  %1462 = vmatpush1.bf16.msra.mxu1 %v4475_v59  ;;  %v5312_v58 = vsub.s32 0, %v334_v55  ;;  %v496_v59 = vunpack.c.l.bf16 %v495_v56 }
 0x101   :  { %1422 = vmatprep.subr.bf16.mxu0 %v4480_v16  ;;  %1463 = vmatprep.subr.bf16.mxu1 %v4483_v60  ;;  %v5314_v16 = vsub.s32 4, %v334_v55  ;;  %v331_v60 = vunpack.c.l.bf16 %v330_v57 }
 0x104   :  { %1423 = vmatpush1.bf16.msra.mxu0 %v4478_v61  ;;  %1464 = vmatpush1.bf16.msra.mxu1 %v4481_v62  ;;  %v5316_v61 = vsub.s32 1, %v334_v55  ;;  %v561_v62 = vsub.s32 5, %v334_v55 }
 0x105   :  { %1424 = vmatprep.subr.bf16.mxu0 %v4486_v63  ;;  %1465 = vmatprep.subr.bf16.mxu1 %v4489_v0  ;;  %v5318_v63 = vsub.s32 2, %v334_v55  ;;  %v557_v0 = vsub.s32 3, %v334_v55 }
 0x108   :  { %1425 = vmatpush1.bf16.msra.mxu0 %v4484_v1  ;;  %1466 = vmatpush1.bf16.msra.mxu1 %v4487_v2  ;;  %v565_v1 = vsub.s32 7, %v334_v55  ;;  %v506_v2 = vrot.slane %v496_v59, %v5312_v58 }
 0x109   :  { %1426 = vmatprep.subr.bf16.mxu0 %v4492_v3  ;;  %1467 = vmatprep.subr.bf16.mxu1 %v4495_v4  ;;  %v514_v3 = vrot.slane %v496_v59, %v5314_v16  ;;  %v336_v4 = vrot.slane %v331_v60, %v5312_v58 }
 0x10c   :  { %1427 = vmatpush1.bf16.msra.mxu0 %v4490_v5  ;;  %1468 = vmatpush1.bf16.msra.mxu1 %v4493_v6  ;;  %v344_v5 = vrot.slane %v331_v60, %v5314_v16  ;;  %v554_v6 = vrot.slane %v496_v59, %v5316_v61 }
 0x10d   :  { %1428 = vmatprep.subr.bf16.mxu0 %v4498_v7  ;;  %1469 = vmatprep.subr.bf16.mxu1 %v4501_v8  ;;  %v562_v7 = vrot.slane %v496_v59, %v561_v62  ;;  %v510_v8 = vrot.slane %v496_v59, %v5318_v63 }
 0x110   :  { %1429 = vmatpush1.bf16.msra.mxu0 %v4496_v9  ;;  %1470 = vmatpush1.bf16.msra.mxu1 %v4499_v10  ;;  %v518_v9 = vrot.slane %v496_v59, %v5320_v37  ;;  %v558_v10 = vrot.slane %v496_v59, %v557_v0 }
 0x111   :  { %1430 = vmatprep.subr.bf16.mxu0 %v4504_v11  ;;  %1471 = vmatprep.subr.bf16.mxu1 %v4507_v12  ;;  %v566_v11 = vrot.slane %v496_v59, %v565_v1  ;;  %v340_v12 = vrot.slane %v331_v60, %v5318_v63 }
 0x114   :  { %1431 = vmatpush1.bf16.msra.mxu0 %v4502_v13  ;;  %1472 = vmatpush1.bf16.msra.mxu1 %v4505_v14  ;;  %v348_v13 = vrot.slane %v331_v60, %v5320_v37  ;;  %v526_v14 = vrot.slane %v506_v2, %v5312_v58 }
 0x115   :  { %1432 = vmatprep.subr.bf16.mxu0 %v4510_v15  ;;  %1473 = vmatprep.subr.bf16.mxu1 %v4513_v17  ;;  %v534_v15 = vrot.slane %v514_v3, %v5312_v58  ;;  %v500_v17 = vpop.permute.xlu0 %499 }
 0x118   :  { %1433 = vmatpush1.bf16.msra.mxu0 %v4508_v18  ;;  %1474 = vmatpush1.bf16.msra.mxu1 %v4511_v19  ;;  %v356_v18 = vrot.slane %v336_v4, %v5312_v58  ;;  %v364_v19 = vrot.slane %v344_v5, %v5312_v58 }
 0x119   :  { %1434 = vmatprep.subr.bf16.mxu0 %v4516_v20  ;;  %1475 = vmatprep.subr.bf16.mxu1 %v4519_v22  ;;  %v574_v20 = vrot.slane %v554_v6, %v5316_v61  ;;  %v582_v22 = vrot.slane %v562_v7, %v5316_v61  ;;  %v4562_v7 = vld [vmem:[#allocation2 + $0xe8] ss:$16 sps:$4 sm:$0xff]  }
 0x11c   :  { %1435 = vmatpush2.bf16.msra.mxu0 %v4514_v23  ;;  %1476 = vmatpush2.bf16.msra.mxu1 %v4517_v24  ;;  %v530_v23 = vrot.slane %v510_v8, %v5312_v58  ;;  %v538_v24 = vrot.slane %v518_v9, %v5312_v58  ;;  %v4565_v8 = vld [vmem:[#allocation2 + $0x2e8] ss:$16 sps:$4 sm:$0xff]  }
 0x11d   :  { %1436 = vmatprep.subr.bf16.mxu0 %v4522_v25  ;;  %1477 = vmatprep.subr.bf16.mxu1 %v4525_v26  ;;  %v578_v25 = vrot.slane %v558_v10, %v5316_v61  ;;  %v586_v26 = vrot.slane %v566_v11, %v5316_v61  ;;  %v4570_v11 = vld [vmem:[#allocation2 + $0xcc] ss:$16 sps:$4 sm:$0xff]  }
 0x120   :  { %1437 = vmatpush2.bf16.msra.mxu0 %v4520_v27  ;;  %1478 = vmatpush2.bf16.msra.mxu1 %v4523_v28  ;;  %v549_v27 = vpop.permute.xlu1 %548  ;;  %v360_v28 = vrot.slane %v340_v12, %v5312_v58  ;;  %v4573_v12 = vld [vmem:[#allocation2 + $0x2cc] ss:$16 sps:$4 sm:$0xff]  }
 0x121   :  { %1438 = vmatprep.subr.bf16.mxu0 %v4528_v29  ;;  %1479 = vmatprep.subr.bf16.mxu1 %v4531_v30  ;;  %v368_v29 = vrot.slane %v348_v13, %v5312_v58  ;;  %v4568_v13 = vld [vmem:[#allocation2 + $0xc8] ss:$16 sps:$4 sm:$0xff]  }
 0x124   :  { %1439 = vmatpush2.bf16.msra.mxu0 %v4526_v31  ;;  %1480 = vmatpush2.bf16.msra.mxu1 %v4529_v32  ;;  %v539_v31 = vmul.f32 %v526_v14, %v500_v17  ;;  %v4571_v14 = vld [vmem:[#allocation2 + $0x2c8] ss:$16 sps:$4 sm:$0xff]  }
 0x125   :  { %1440 = vmatprep.subr.bf16.mxu0 %v4534_v33  ;;  %1481 = vmatprep.subr.bf16.mxu1 %v4537_v34  ;;  %v541_v33 = vmul.f32 %v534_v15, %v500_v17  ;;  %v4576_v15 = vld [vmem:[#allocation2 + $0xac] ss:$16 sps:$4 sm:$0xff]  }
 0x128   :  { %1441 = vmatpush2.bf16.msra.mxu0 %v4532_v35  ;;  %1482 = vmatpush2.bf16.msra.mxu1 %v4535_v36  ;;  %v587_v36 = vmul.f32 %v574_v20, %v549_v27  ;;  %v4582_v20 = vld [vmem:[#allocation2 + $0x8c] ss:$16 sps:$4 sm:$0xff]  }
 0x129   :  { %1442 = vmatprep.subr.bf16.mxu0 %v4540_v38  ;;  %1483 = vmatprep.subr.bf16.mxu1 %v4543_v39  ;;  %v589_v38 = vmul.f32 %v582_v22, %v549_v27  ;;  %v4585_v22 = vld [vmem:[#allocation2 + $0x28c] ss:$16 sps:$4 sm:$0xff]  }
 0x12c   :  { %1443 = vmatpush2.bf16.msra.mxu0 %v4538_v40  ;;  %1484 = vmatpush2.bf16.msra.mxu1 %v4541_v41  ;;  %v540_v40 = vmul.f32 %v530_v23, %v500_v17  ;;  %v4580_v23 = vld [vmem:[#allocation2 + $0x88] ss:$16 sps:$4 sm:$0xff]  }
 0x12d   :  { %1444 = vmatprep.subr.bf16.mxu0 %v4546_v42  ;;  %1485 = vmatprep.subr.bf16.mxu1 %v4549_v43  ;;  %v542_v42 = vmul.f32 %v538_v24, %v500_v17  ;;  %v588_v43 = vmul.f32 %v578_v25, %v549_v27  ;;  %v4579_v17 = vld [vmem:[#allocation2 + $0x2ac] ss:$16 sps:$4 sm:$0xff]   ;;  %v4583_v24 = vld [vmem:[#allocation2 + $0x288] ss:$16 sps:$4 sm:$0xff]  }
 0x12e   :  { %v4588_v25 = vld [vmem:[#allocation2 + $0x6c] ss:$16 sps:$4 sm:$0xff]  }
 0x130   :  { %1445 = vmatpush2.bf16.msra.mxu0 %v4544_v44  ;;  %1486 = vmatpush2.bf16.msra.mxu1 %v4547_v21  ;;  %v590_v44 = vmul.f32 %v586_v26, %v549_v27  ;;  %v4591_v26 = vld [vmem:[#allocation2 + $0x26c] ss:$16 sps:$4 sm:$0xff]   ;;  %v4586_v27 = vld [vmem:[#allocation2 + $0x68] ss:$16 sps:$4 sm:$0xff]  }
 0x131   :  { %1446 = vmatprep.subr.bf16.mxu0 %v4552_v45  ;;  %1487 = vmatprep.subr.bf16.mxu1 %v4555_v46 }
 0x134   :  { %1447 = vmatpush2.bf16.msra.mxu0 %v4550_v47  ;;  %1488 = vmatpush2.bf16.msra.mxu1 %v4553_v48 }
 0x135   :  { %1448 = vmatprep.subr.bf16.mxu0 %v4558_v49  ;;  %1489 = vmatprep.subr.bf16.mxu1 %v4561_v52 }
 0x138   :  { %1449 = vmatpush2.bf16.msra.mxu0 %v4556_v50  ;;  %1490 = vmatpush2.bf16.msra.mxu1 %v4559_v51 }
 0x139   :  { %1500 = vmatprep.subr.bf16.mxu0 %v4564_v53  ;;  %1541 = vmatprep.subr.bf16.mxu1 %v4567_v54 }
 0x1bb   :  { %v447_v30 = vpop.f32.mrf.mxu0  ;;  %v488_v32 = vpop.f32.mrf.mxu1 }
 0x1bc   :  { %v448_v34 = vadd.f32 %v447_v30, %v356_v18  ;;  %v489_v35 = vadd.f32 %v488_v32, %v364_v19  ;;  %v4574_v18 = vld [vmem:[#allocation2 + $0xa8] ss:$16 sps:$4 sm:$0xff]   ;;  %v4597_v30 = vld [vmem:[#allocation2 + $0x24c] ss:$16 sps:$4 sm:$0xff]  }
 0x1bd   :  { %v449_v39 = vpop.f32.mrf.mxu0  ;;  %v490_v41 = vpop.f32.mrf.mxu1  ;;  %v4577_v19 = vld [vmem:[#allocation2 + $0x2a8] ss:$16 sps:$4 sm:$0xff]  }
 0x1be   :  { %v543_v21 = vadd.f32 %v539_v31, %v448_v34  ;;  %v545_v45 = vadd.f32 %v541_v33, %v489_v35  ;;  %v450_v46 = vadd.f32 %v449_v39, %v360_v28  ;;  %v491_v47 = vadd.f32 %v490_v41, %v368_v29  ;;  %v4589_v28 = vld [vmem:[#allocation2 + $0x268] ss:$16 sps:$4 sm:$0xff]   ;;  %v4594_v29 = vld [vmem:[#allocation2 + $0x4c] ss:$16 sps:$4 sm:$0xff]  }
 0x1bf   :  { %v451_v48 = vpop.f32.mrf.mxu0  ;;  %v492_v49 = vpop.f32.mrf.mxu1  ;;  %v4592_v31 = vld [vmem:[#allocation2 + $0x48] ss:$16 sps:$4 sm:$0xff]   ;;  %v4600_v33 = vld [vmem:[#allocation2 + $0x2c] ss:$16 sps:$4 sm:$0xff]  }
 0x1c0   :  { %v544_v50 = vadd.f32 %v540_v40, %v450_v46  ;;  %v546_v51 = vadd.f32 %v542_v42, %v491_v47  ;;  %v591_v52 = vadd.f32 %v587_v36, %v543_v21  ;;  %v593_v53 = vadd.f32 %v589_v38, %v545_v45  ;;  %v4595_v32 = vld [vmem:[#allocation2 + $0x248] ss:$16 sps:$4 sm:$0xff]   ;;  %v4603_v34 = vld [vmem:[#allocation2 + $0x22c] ss:$16 sps:$4 sm:$0xff]  }
 0x1c1   :  { %v452_v54 = vpop.f32.mrf.mxu0  ;;  %v493_v55 = vpop.f32.mrf.mxu1  ;;  %v4598_v35 = vld [vmem:[#allocation2 + $0x28] ss:$16 sps:$4 sm:$0xff]   ;;  %v4606_v38 = vld [vmem:[#allocation2 + $0xc] ss:$16 sps:$4 sm:$0xff]  }
 0x1c2   :  { %v592_v56 = vadd.f32 %v588_v43, %v544_v50  ;;  %v594_v57 = vadd.f32 %v590_v44, %v546_v51  ;;  %vm595_vm2 = vcmp.gt.f32.partialorder %v591_v52, 0.0  ;;  %v599_v59 = vmul.f32 0.01, %v591_v52  ;;  %v4601_v36 = vld [vmem:[#allocation2 + $0x228] ss:$16 sps:$4 sm:$0xff]  }
 0x1c3   :  { %vm597_vm3 = vcmp.gt.f32.partialorder %v593_v53, 0.0  ;;  %v601_v60 = vmul.f32 0.01, %v593_v53  ;;  %v4609_v39 = vld [vmem:[#allocation2 + $0x20c] ss:$16 sps:$4 sm:$0xff]  }
 0x1c4   :  { %vm596_vm4 = vcmp.gt.f32.partialorder %v592_v56, 0.0  ;;  %v600_v62 = vmul.f32 0.01, %v592_v56  ;;  %vm598_vm5 = vcmp.gt.f32.partialorder %v594_v57, 0.0  ;;  %v602_v0 = vmul.f32 0.01, %v594_v57 }
 0x1c5   :  { %v603_v1 = vsel %vm595_vm2, %v591_v52, %v599_v59  ;;  %v605_v2 = vsel %vm597_vm3, %v593_v53, %v601_v60  ;;  %v4604_v40 = vld [vmem:[#allocation2 + $0x8] ss:$16 sps:$4 sm:$0xff]   ;;  %v4612_v42 = vld [vmem:[#allocation2 + $0x1ec] ss:$16 sps:$4 sm:$0xff]   ;;  %vm3946_vm3 = vcmask 15360  }
 0x1c6   :  { %v604_v3 = vsel %vm596_vm4, %v592_v56, %v600_v62  ;;  %v606_v4 = vsel %vm598_vm5, %v594_v57, %v602_v0  ;;  %v5343_v9 = vpack.c.bf16 %v603_v1, %v603_v1  ;;  %v5345_v10 = vpack.c.bf16 %v605_v2, %v605_v2  ;;  %v4607_v41 = vld [vmem:[#allocation2 + $0x208] ss:$16 sps:$4 sm:$0xff]   ;;  %v4615_v43 = vld [vmem:[#allocation2 + $0x3ec] ss:$16 sps:$4 sm:$0xff]  }
 0x1c7   :  { %v608_v5 = vpack.c.bf16 %v604_v3, %v604_v3  ;;  %v610_v6 = vpack.c.bf16 %v606_v4, %v606_v4  ;;  %v4610_v44 = vld [vmem:[#allocation2 + $0x1e8] ss:$16 sps:$4 sm:$0xff]   ;;  %v4618_v45 = vld [vmem:[#allocation2 + $0x1cc] ss:$16 sps:$4 sm:$0xff]  }
 0x1c8   :  { %v4613_v21 = vld [vmem:[#allocation2 + $0x3e8] ss:$16 sps:$4 sm:$0xff]   ;;  %v4621_v46 = vld [vmem:[#allocation2 + $0x3cc] ss:$16 sps:$4 sm:$0xff]  }
 0x1c9   :  { %1450 = vmatprep.mubr.bf16.mxu0 %v608_v5  ;;  %1491 = vmatprep.mubr.bf16.mxu1 %v610_v6  ;;  %v4616_v47 = vld [vmem:[#allocation2 + $0x1c8] ss:$16 sps:$4 sm:$0xff]   ;;  %v4624_v49 = vld [vmem:[#allocation2 + $0x1ac] ss:$16 sps:$4 sm:$0xff]  }
 0x1ca   :  { %1451 = vmatmul.mubr.bf16.vlgmr.msra.gmra.mxu0 %v5343_v9  ;;  %1492 = vmatmul.mubr.bf16.vlgmr.msra.gmra.mxu1 %v5345_v10  ;;  %v4619_v48 = vld [vmem:[#allocation2 + $0x3c8] ss:$16 sps:$4 sm:$0xff]   ;;  %v4627_v50 = vld [vmem:[#allocation2 + $0x3ac] ss:$16 sps:$4 sm:$0xff]  }
 0x1cb   :  { %1501 = vmatpush1.bf16.msra.mxu0 %v4562_v7  ;;  %1542 = vmatpush1.bf16.msra.mxu1 %v4565_v8  ;;  %v4622_v51 = vld [vmem:[#allocation2 + $0x1a8] ss:$16 sps:$4 sm:$0xff]   ;;  %v4630_v53 = vld [vmem:[#allocation2 + $0x18c] ss:$16 sps:$4 sm:$0xff]  }
 0x1cc   :  { %1532 = vmatprep.mubr.bf16.mxu0 %v608_v5  ;;  %1573 = vmatprep.mubr.bf16.mxu1 %v610_v6  ;;  %v4625_v52 = vld [vmem:[#allocation2 + $0x3a8] ss:$16 sps:$4 sm:$0xff]   ;;  %v4633_v54 = vld [vmem:[#allocation2 + $0x38c] ss:$16 sps:$4 sm:$0xff]  }
 0x1cd   :  { %1502 = vmatprep.subr.bf16.mxu0 %v4570_v11  ;;  %1543 = vmatprep.subr.bf16.mxu1 %v4573_v12  ;;  %v4628_v55 = vld [vmem:[#allocation2 + $0x188] ss:$16 sps:$4 sm:$0xff]   ;;  %v4636_v57 = vld [vmem:[#allocation2 + $0x16c] ss:$16 sps:$4 sm:$0xff]  }
 0x1ce   :  { %v4631_v56 = vld [vmem:[#allocation2 + $0x388] ss:$16 sps:$4 sm:$0xff]   ;;  %v4639_v59 = vld [vmem:[#allocation2 + $0x36c] ss:$16 sps:$4 sm:$0xff]  }
 0x1cf   :  { %1503 = vmatpush1.bf16.msra.mxu0 %v4568_v13  ;;  %1544 = vmatpush1.bf16.msra.mxu1 %v4571_v14  ;;  %v4634_v60 = vld [vmem:[#allocation2 + $0x168] ss:$16 sps:$4 sm:$0xff]   ;;  %v4642_v0 = vld [vmem:[#allocation2 + $0x14c] ss:$16 sps:$4 sm:$0xff]   ;;  %v4660_v14 = vld [vmem:[#allocation4 + $0xe4] ss:$16 sps:$4 sm:$0xff]  }
 0x1d0   :  { %1504 = vmatprep.subr.bf16.mxu0 %v4576_v15  ;;  %1545 = vmatprep.subr.bf16.mxu1 %v4579_v17  ;;  %v4637_v62 = vld [vmem:[#allocation2 + $0x368] ss:$16 sps:$4 sm:$0xff]   ;;  %v4645_v1 = vld [vmem:[#allocation2 + $0x34c] ss:$16 sps:$4 sm:$0xff]   ;;  %v4658_v15 = vld [vmem:[#allocation4 + $0xe0] ss:$16 sps:$4 sm:$0xff]  }
 0x1d1   :  { %v4640_v2 = vld [vmem:[#allocation2 + $0x148] ss:$16 sps:$4 sm:$0xff]   ;;  %v4648_v4 = vld [vmem:[#allocation2 + $0x12c] ss:$16 sps:$4 sm:$0xff]   ;;  %v4663_v17 = vld [vmem:[#allocation4 + $0xc4] ss:$16 sps:$4 sm:$0xff]  }
 0x1d2   :  { %v4643_v3 = vld [vmem:[#allocation2 + $0x348] ss:$16 sps:$4 sm:$0xff]   ;;  %v4651_v5 = vld [vmem:[#allocation2 + $0x32c] ss:$16 sps:$4 sm:$0xff]  }
 0x1d3   :  { %1505 = vmatpush1.bf16.msra.mxu0 %v4574_v18  ;;  %1546 = vmatpush1.bf16.msra.mxu1 %v4577_v19  ;;  %v4646_v6 = vld [vmem:[#allocation2 + $0x128] ss:$16 sps:$4 sm:$0xff]   ;;  %v4654_v8 = vld [vmem:[#allocation2 + $0x10c] ss:$16 sps:$4 sm:$0xff]   ;;  %v4661_v18 = vld [vmem:[#allocation4 + $0xc0] ss:$16 sps:$4 sm:$0xff]  }
 0x1d4   :  { %1506 = vmatprep.subr.bf16.mxu0 %v4582_v20  ;;  %1547 = vmatprep.subr.bf16.mxu1 %v4585_v22  ;;  %v4649_v7 = vld [vmem:[#allocation2 + $0x328] ss:$16 sps:$4 sm:$0xff]   ;;  %v4657_v11 = vld [vmem:[#allocation2 + $0x30c] ss:$16 sps:$4 sm:$0xff]   ;;  %v4666_v19 = vld [vmem:[#allocation4 + $0xa4] ss:$16 sps:$4 sm:$0xff]  }
 0x1d5   :  { %v4652_v12 = vld [vmem:[#allocation2 + $0x108] ss:$16 sps:$4 sm:$0xff]   ;;  %v4664_v20 = vld [vmem:[#allocation4 + $0xa0] ss:$16 sps:$4 sm:$0xff]   ;;  %v4669_v22 = vld [vmem:[#allocation4 + $0x84] ss:$16 sps:$4 sm:$0xff]  }
 0x1d6   :  { %v4655_v13 = vld [vmem:[#allocation2 + $0x308] ss:$16 sps:$4 sm:$0xff]  }
 0x1d7   :  { %1507 = vmatpush1.bf16.msra.mxu0 %v4580_v23  ;;  %1548 = vmatpush1.bf16.msra.mxu1 %v4583_v24  ;;  %v4706_v23 = vld [vmem:[#allocation4 + $0x2e0] ss:$16 sps:$4 sm:$0xff]   ;;  %v4708_v24 = vld [vmem:[#allocation4 + $0x2e4] ss:$16 sps:$4 sm:$0xff]  }
 0x1d8   :  { %1508 = vmatprep.subr.bf16.mxu0 %v4588_v25  ;;  %1549 = vmatprep.subr.bf16.mxu1 %v4591_v26  ;;  %v4667_v25 = vld [vmem:[#allocation4 + $0x80] ss:$16 sps:$4 sm:$0xff]   ;;  %v4672_v26 = vld [vmem:[#allocation4 + $0x64] ss:$16 sps:$4 sm:$0xff]  }
 0x1db   :  { %1509 = vmatpush1.bf16.msra.mxu0 %v4586_v27  ;;  %1550 = vmatpush1.bf16.msra.mxu1 %v4589_v28  ;;  %v4712_v27 = vld [vmem:[#allocation4 + $0x2c0] ss:$16 sps:$4 sm:$0xff]   ;;  %v4714_v28 = vld [vmem:[#allocation4 + $0x2c4] ss:$16 sps:$4 sm:$0xff]  }
 0x1dc   :  { %1510 = vmatprep.subr.bf16.mxu0 %v4594_v29  ;;  %1551 = vmatprep.subr.bf16.mxu1 %v4597_v30  ;;  %v4673_v29 = vld [vmem:[#allocation4 + $0x40] ss:$16 sps:$4 sm:$0xff]   ;;  %v4678_v30 = vld [vmem:[#allocation4 + $0x24] ss:$16 sps:$4 sm:$0xff]  }
 0x1df   :  { %1511 = vmatpush1.bf16.msra.mxu0 %v4592_v31  ;;  %1552 = vmatpush1.bf16.msra.mxu1 %v4595_v32  ;;  %v4718_v31 = vld [vmem:[#allocation4 + $0x2a0] ss:$16 sps:$4 sm:$0xff]   ;;  %v4720_v32 = vld [vmem:[#allocation4 + $0x2a4] ss:$16 sps:$4 sm:$0xff]  }
 0x1e0   :  { %1512 = vmatprep.subr.bf16.mxu0 %v4600_v33  ;;  %1553 = vmatprep.subr.bf16.mxu1 %v4603_v34  ;;  %v4676_v33 = vld [vmem:[#allocation4 + $0x20] ss:$16 sps:$4 sm:$0xff]   ;;  %v4681_v34 = vld [vmem:[#allocation4 + $0x4] ss:$16 sps:$4 sm:$0xff]  }
 0x1e3   :  { %1513 = vmatpush1.bf16.msra.mxu0 %v4598_v35  ;;  %1554 = vmatpush1.bf16.msra.mxu1 %v4601_v36  ;;  %v4724_v35 = vld [vmem:[#allocation4 + $0x280] ss:$16 sps:$4 sm:$0xff]   ;;  %v4726_v36 = vld [vmem:[#allocation4 + $0x284] ss:$16 sps:$4 sm:$0xff]  }
 0x1e4   :  { %1514 = vmatprep.subr.bf16.mxu0 %v4606_v38  ;;  %1555 = vmatprep.subr.bf16.mxu1 %v4609_v39  ;;  %v4679_v38 = vld [vmem:[#allocation4] ss:$16 sps:$4 sm:$0xff]   ;;  %v4684_v39 = vld [vmem:[#allocation4 + $0x1e4] ss:$16 sps:$4 sm:$0xff]  }
 0x1e7   :  { %1515 = vmatpush1.bf16.msra.mxu0 %v4604_v40  ;;  %1556 = vmatpush1.bf16.msra.mxu1 %v4607_v41  ;;  %v4730_v40 = vld [vmem:[#allocation4 + $0x260] ss:$16 sps:$4 sm:$0xff]   ;;  %v4732_v41 = vld [vmem:[#allocation4 + $0x264] ss:$16 sps:$4 sm:$0xff]  }
 0x1e8   :  { %1516 = vmatprep.subr.bf16.mxu0 %v4612_v42  ;;  %1557 = vmatprep.subr.bf16.mxu1 %v4615_v43  ;;  %v4682_v42 = vld [vmem:[#allocation4 + $0x1e0] ss:$16 sps:$4 sm:$0xff]   ;;  %v4687_v43 = vld [vmem:[#allocation4 + $0x1c4] ss:$16 sps:$4 sm:$0xff]  }
 0x1eb   :  { %1517 = vmatpush2.bf16.msra.mxu0 %v4610_v44  ;;  %1558 = vmatpush2.bf16.msra.mxu1 %v4613_v21  ;;  %v4736_v44 = vld [vmem:[#allocation4 + $0x240] ss:$16 sps:$4 sm:$0xff]   ;;  %v4738_v21 = vld [vmem:[#allocation4 + $0x244] ss:$16 sps:$4 sm:$0xff]  }
 0x1ec   :  { %1518 = vmatprep.subr.bf16.mxu0 %v4618_v45  ;;  %1559 = vmatprep.subr.bf16.mxu1 %v4621_v46  ;;  %v4685_v45 = vld [vmem:[#allocation4 + $0x1c0] ss:$16 sps:$4 sm:$0xff]   ;;  %v4690_v46 = vld [vmem:[#allocation4 + $0x1a4] ss:$16 sps:$4 sm:$0xff]  }
 0x1ef   :  { %1519 = vmatpush2.bf16.msra.mxu0 %v4616_v47  ;;  %1560 = vmatpush2.bf16.msra.mxu1 %v4619_v48  ;;  %v4742_v47 = vld [vmem:[#allocation4 + $0x220] ss:$16 sps:$4 sm:$0xff]   ;;  %v4744_v48 = vld [vmem:[#allocation4 + $0x224] ss:$16 sps:$4 sm:$0xff]  }
 0x1f0   :  { %1520 = vmatprep.subr.bf16.mxu0 %v4624_v49  ;;  %1561 = vmatprep.subr.bf16.mxu1 %v4627_v50  ;;  %v4688_v49 = vld [vmem:[#allocation4 + $0x1a0] ss:$16 sps:$4 sm:$0xff]   ;;  %v4693_v50 = vld [vmem:[#allocation4 + $0x184] ss:$16 sps:$4 sm:$0xff]  }
 0x1f3   :  { %1521 = vmatpush2.bf16.msra.mxu0 %v4622_v51  ;;  %1562 = vmatpush2.bf16.msra.mxu1 %v4625_v52  ;;  %v4748_v51 = vld [vmem:[#allocation4 + $0x200] ss:$16 sps:$4 sm:$0xff]   ;;  %v4750_v52 = vld [vmem:[#allocation4 + $0x204] ss:$16 sps:$4 sm:$0xff]  }
 0x1f4   :  { %1522 = vmatprep.subr.bf16.mxu0 %v4630_v53  ;;  %1563 = vmatprep.subr.bf16.mxu1 %v4633_v54  ;;  %v4691_v53 = vld [vmem:[#allocation4 + $0x180] ss:$16 sps:$4 sm:$0xff]   ;;  %v4696_v54 = vld [vmem:[#allocation4 + $0x164] ss:$16 sps:$4 sm:$0xff]  }
 0x1f7   :  { %1523 = vmatpush2.bf16.msra.mxu0 %v4628_v55  ;;  %1564 = vmatpush2.bf16.msra.mxu1 %v4631_v56  ;;  %v4754_v55 = vld [vmem:[#allocation4 + $0x3e0] ss:$16 sps:$4 sm:$0xff]   ;;  %v4756_v56 = vld [vmem:[#allocation4 + $0x3e4] ss:$16 sps:$4 sm:$0xff]  }
 0x1f8   :  { %1524 = vmatprep.subr.bf16.mxu0 %v4636_v57  ;;  %1565 = vmatprep.subr.bf16.mxu1 %v4639_v59  ;;  %v4694_v57 = vld [vmem:[#allocation4 + $0x160] ss:$16 sps:$4 sm:$0xff]   ;;  %v4699_v59 = vld [vmem:[#allocation4 + $0x144] ss:$16 sps:$4 sm:$0xff]  }
 0x1fb   :  { %1525 = vmatpush2.bf16.msra.mxu0 %v4634_v60  ;;  %1566 = vmatpush2.bf16.msra.mxu1 %v4637_v62  ;;  %v4760_v60 = vld [vmem:[#allocation4 + $0x3c0] ss:$16 sps:$4 sm:$0xff]   ;;  %v4762_v62 = vld [vmem:[#allocation4 + $0x3c4] ss:$16 sps:$4 sm:$0xff]  }
 0x1fc   :  { %1526 = vmatprep.subr.bf16.mxu0 %v4642_v0  ;;  %1567 = vmatprep.subr.bf16.mxu1 %v4645_v1  ;;  %v4697_v0 = vld [vmem:[#allocation4 + $0x140] ss:$16 sps:$4 sm:$0xff]   ;;  %v4702_v1 = vld [vmem:[#allocation4 + $0x124] ss:$16 sps:$4 sm:$0xff]  }
 0x1ff   :  { %1527 = vmatpush2.bf16.msra.mxu0 %v4640_v2  ;;  %1568 = vmatpush2.bf16.msra.mxu1 %v4643_v3  ;;  %v4766_v2 = vld [vmem:[#allocation4 + $0x3a0] ss:$16 sps:$4 sm:$0xff]   ;;  %v4768_v3 = vld [vmem:[#allocation4 + $0x3a4] ss:$16 sps:$4 sm:$0xff]  }
 0x200   :  { %1528 = vmatprep.subr.bf16.mxu0 %v4648_v4  ;;  %1569 = vmatprep.subr.bf16.mxu1 %v4651_v5  ;;  %v4700_v4 = vld [vmem:[#allocation4 + $0x120] ss:$16 sps:$4 sm:$0xff]   ;;  %v4705_v5 = vld [vmem:[#allocation4 + $0x104] ss:$16 sps:$4 sm:$0xff]  }
 0x203   :  { %1529 = vmatpush2.bf16.msra.mxu0 %v4646_v6  ;;  %1570 = vmatpush2.bf16.msra.mxu1 %v4649_v7  ;;  %v4772_v6 = vld [vmem:[#allocation4 + $0x380] ss:$16 sps:$4 sm:$0xff]   ;;  %v4774_v7 = vld [vmem:[#allocation4 + $0x384] ss:$16 sps:$4 sm:$0xff]  }
 0x204   :  { %1530 = vmatprep.subr.bf16.mxu0 %v4654_v8  ;;  %1571 = vmatprep.subr.bf16.mxu1 %v4657_v11  ;;  %v4703_v8 = vld [vmem:[#allocation4 + $0x100] ss:$16 sps:$4 sm:$0xff]   ;;  %v4711_v11 = vld [vmem:[#allocation4 + $0xec] ss:$16 sps:$4 sm:$0xff]  }
 0x207   :  { %1531 = vmatpush2.bf16.msra.mxu0 %v4652_v12  ;;  %1572 = vmatpush2.bf16.msra.mxu1 %v4655_v13  ;;  %v4778_v12 = vld [vmem:[#allocation4 + $0x360] ss:$16 sps:$4 sm:$0xff]   ;;  %v4780_v13 = vld [vmem:[#allocation4 + $0x364] ss:$16 sps:$4 sm:$0xff]  }
 0x208   :  { %2405 = vmatprep.subr.bf16.mxu0 %v4660_v14  ;;  %2446 = vmatprep.subr.bf16.mxu1 %v4708_v24  ;;  %v4786_v14 = vld [vmem:[#allocation4 + $0x344] ss:$16 sps:$4 sm:$0xff]  }
 0x20a   :  { %1533 = vmatmul.mubr.bf16.vlgmr.msra.gmra.mxu0 %v5343_v9  ;;  %1574 = vmatmul.mubr.bf16.vlgmr.msra.gmra.mxu1 %v5345_v10  ;;  %v4670_v9 = vld [vmem:[#allocation4 + $0x60] ss:$16 sps:$4 sm:$0xff]   ;;  %v4675_v10 = vld [vmem:[#allocation4 + $0x44] ss:$16 sps:$4 sm:$0xff]  }
 0x20b   :  { %2406 = vmatpush1.bf16.msra.mxu0 %v4658_v15  ;;  %2447 = vmatpush1.bf16.msra.mxu1 %v4706_v23  ;;  %v4784_v15 = vld [vmem:[#allocation4 + $0x340] ss:$16 sps:$4 sm:$0xff]  }
 0x20c   :  { %2407 = vmatprep.subr.bf16.mxu0 %v4663_v17  ;;  %2448 = vmatprep.subr.bf16.mxu1 %v4714_v28  ;;  %v4792_v17 = vld [vmem:[#allocation4 + $0x324] ss:$16 sps:$4 sm:$0xff]   ;;  %v739_v23 = vld [vmem:[%s5537_s7] sm:$0xf] }
 0x20d   :  { %v5354_v24 = vunpack.c.l.bf16 %v739_v23 }
 0x20f   :  { %2408 = vmatpush1.bf16.msra.mxu0 %v4661_v18  ;;  %2449 = vmatpush1.bf16.msra.mxu1 %v4712_v27  ;;  %v4790_v18 = vld [vmem:[#allocation4 + $0x320] ss:$16 sps:$4 sm:$0xff]  }
 0x210   :  { %2409 = vmatprep.subr.bf16.mxu0 %v4666_v19  ;;  %2450 = vmatprep.subr.bf16.mxu1 %v4720_v32  ;;  %v4798_v19 = vld [vmem:[#allocation4 + $0x304] ss:$16 sps:$4 sm:$0xff]  }
 0x213   :  { %2410 = vmatpush1.bf16.msra.mxu0 %v4664_v20  ;;  %2451 = vmatpush1.bf16.msra.mxu1 %v4718_v31  ;;  %v4796_v20 = vld [vmem:[#allocation4 + $0x300] ss:$16 sps:$4 sm:$0xff]  }
 0x214   :  { %2411 = vmatprep.subr.bf16.mxu0 %v4669_v22  ;;  %2452 = vmatprep.subr.bf16.mxu1 %v4726_v36  ;;  %v4804_v22 = vld [vmem:[#allocation4 + $0x2ec] ss:$16 sps:$4 sm:$0xff]  }
 0x217   :  { %2412 = vmatpush1.bf16.msra.mxu0 %v4667_v25  ;;  %2453 = vmatpush1.bf16.msra.mxu1 %v4724_v35  ;;  %v745_v25 = vrot.slane %v5354_v24, %v5312_v58 }
 0x218   :  { %2413 = vmatprep.subr.bf16.mxu0 %v4672_v26  ;;  %2454 = vmatprep.subr.bf16.mxu1 %v4732_v41  ;;  %v749_v26 = vrot.slane %v5354_v24, %v5318_v63 }
 0x21b   :  { %2414 = vmatpush1.bf16.msra.mxu0 %v4670_v9  ;;  %2455 = vmatpush1.bf16.msra.mxu1 %v4730_v40  ;;  %v765_v9 = vrot.slane %v745_v25, %v5312_v58 }
 0x21c   :  { %2415 = vmatprep.subr.bf16.mxu0 %v4675_v10  ;;  %2456 = vmatprep.subr.bf16.mxu1 %v4738_v21  ;;  %v769_v10 = vrot.slane %v749_v26, %v5312_v58  ;;  %v4709_v21 = vld [vmem:[#allocation4 + $0xe8] ss:$16 sps:$4 sm:$0xff]  }
 0x21d   :  { %v4793_v26 = vld [vmem:[#allocation4 + $0x128] ss:$16 sps:$4 sm:$0xff]  }
 0x21f   :  { %2416 = vmatpush1.bf16.msra.mxu0 %v4673_v29  ;;  %2457 = vmatpush1.bf16.msra.mxu1 %v4736_v44 }
 0x220   :  { %2417 = vmatprep.subr.bf16.mxu0 %v4678_v30  ;;  %2458 = vmatprep.subr.bf16.mxu1 %v4744_v48  ;;  %v4723_v48 = vld [vmem:[#allocation4 + $0xac] ss:$16 sps:$4 sm:$0xff]  }
 0x223   :  { %2418 = vmatpush1.bf16.msra.mxu0 %v4676_v33  ;;  %2459 = vmatpush1.bf16.msra.mxu1 %v4742_v47  ;;  %v4715_v47 = vld [vmem:[#allocation4 + $0xc8] ss:$16 sps:$4 sm:$0xff]  }
 0x224   :  { %2419 = vmatprep.subr.bf16.mxu0 %v4681_v34  ;;  %2460 = vmatprep.subr.bf16.mxu1 %v4750_v52  ;;  %v4735_v52 = vld [vmem:[#allocation4 + $0x6c] ss:$16 sps:$4 sm:$0xff]  }
 0x227   :  { %2420 = vmatpush1.bf16.msra.mxu0 %v4679_v38  ;;  %2461 = vmatpush1.bf16.msra.mxu1 %v4748_v51  ;;  %v4727_v51 = vld [vmem:[#allocation4 + $0x88] ss:$16 sps:$4 sm:$0xff]  }
 0x228   :  { %2421 = vmatprep.subr.bf16.mxu0 %v4684_v39  ;;  %2462 = vmatprep.subr.bf16.mxu1 %v4756_v56  ;;  %v4747_v56 = vld [vmem:[#allocation4 + $0x2c] ss:$16 sps:$4 sm:$0xff]  }
 0x22b   :  { %2422 = vmatpush2.bf16.msra.mxu0 %v4682_v42  ;;  %2463 = vmatpush2.bf16.msra.mxu1 %v4754_v55  ;;  %v4739_v55 = vld [vmem:[#allocation4 + $0x48] ss:$16 sps:$4 sm:$0xff]  }
 0x22c   :  { %2423 = vmatprep.subr.bf16.mxu0 %v4687_v43  ;;  %2464 = vmatprep.subr.bf16.mxu1 %v4762_v62  ;;  %v4759_v62 = vld [vmem:[#allocation4 + $0x1ec] ss:$16 sps:$4 sm:$0xff]  }
 0x22f   :  { %2424 = vmatpush2.bf16.msra.mxu0 %v4685_v45  ;;  %2465 = vmatpush2.bf16.msra.mxu1 %v4760_v60  ;;  %v4751_v60 = vld [vmem:[#allocation4 + $0x8] ss:$16 sps:$4 sm:$0xff]  }
 0x230   :  { %2425 = vmatprep.subr.bf16.mxu0 %v4690_v46  ;;  %2466 = vmatprep.subr.bf16.mxu1 %v4768_v3  ;;  %v4717_v46 = vld [vmem:[#allocation4 + $0xcc] ss:$16 sps:$4 sm:$0xff]  }
 0x231   :  { %v4771_v3 = vld [vmem:[#allocation4 + $0x1ac] ss:$16 sps:$4 sm:$0xff]  }
 0x233   :  { %2426 = vmatpush2.bf16.msra.mxu0 %v4688_v49  ;;  %2467 = vmatpush2.bf16.msra.mxu1 %v4766_v2  ;;  %v4721_v49 = vld [vmem:[#allocation4 + $0xa8] ss:$16 sps:$4 sm:$0xff]  }
 0x234   :  { %2427 = vmatprep.subr.bf16.mxu0 %v4693_v50  ;;  %2468 = vmatprep.subr.bf16.mxu1 %v4774_v7  ;;  %v4729_v50 = vld [vmem:[#allocation4 + $0x8c] ss:$16 sps:$4 sm:$0xff]   ;;  %v4763_v2 = vld [vmem:[#allocation4 + $0x1c8] ss:$16 sps:$4 sm:$0xff]  }
 0x235   :  { %v4783_v7 = vld [vmem:[#allocation4 + $0x16c] ss:$16 sps:$4 sm:$0xff]  }
 0x237   :  { %2428 = vmatpush2.bf16.msra.mxu0 %v4691_v53  ;;  %2469 = vmatpush2.bf16.msra.mxu1 %v4772_v6  ;;  %v4733_v53 = vld [vmem:[#allocation4 + $0x68] ss:$16 sps:$4 sm:$0xff]  }
 0x238   :  { %2429 = vmatprep.subr.bf16.mxu0 %v4696_v54  ;;  %2470 = vmatprep.subr.bf16.mxu1 %v4780_v13  ;;  %v4741_v54 = vld [vmem:[#allocation4 + $0x4c] ss:$16 sps:$4 sm:$0xff]   ;;  %v4775_v6 = vld [vmem:[#allocation4 + $0x188] ss:$16 sps:$4 sm:$0xff]   ;;  %v757_v13 = vrot.slane %v5354_v24, %v5320_v37 }
 0x23b   :  { %2430 = vmatpush2.bf16.msra.mxu0 %v4694_v57  ;;  %2471 = vmatpush2.bf16.msra.mxu1 %v4778_v12  ;;  %v4745_v57 = vld [vmem:[#allocation4 + $0x28] ss:$16 sps:$4 sm:$0xff]   ;;  %v4789_v12 = vld [vmem:[#allocation4 + $0x14c] ss:$16 sps:$4 sm:$0xff]  }
 0x23c   :  { %2431 = vmatprep.subr.bf16.mxu0 %v4699_v59  ;;  %2472 = vmatprep.subr.bf16.mxu1 %v4786_v14  ;;  %v4753_v59 = vld [vmem:[#allocation4 + $0xc] ss:$16 sps:$4 sm:$0xff]  }
 0x23f   :  { %2432 = vmatpush2.bf16.msra.mxu0 %v4697_v0  ;;  %2473 = vmatpush2.bf16.msra.mxu1 %v4784_v15  ;;  %v4757_v0 = vld [vmem:[#allocation4 + $0x1e8] ss:$16 sps:$4 sm:$0xff]  }
 0x240   :  { %2433 = vmatprep.subr.bf16.mxu0 %v4702_v1  ;;  %2474 = vmatprep.subr.bf16.mxu1 %v4792_v17  ;;  %v4765_v1 = vld [vmem:[#allocation4 + $0x1cc] ss:$16 sps:$4 sm:$0xff]   ;;  %v4787_v15 = vld [vmem:[#allocation4 + $0x148] ss:$16 sps:$4 sm:$0xff]   ;;  %v777_v17 = vrot.slane %v757_v13, %v5312_v58 }
 0x241   :  { %v4829_v13 = vld [vmem:[#allocation4 + $0x3c8] ss:$16 sps:$4 sm:$0xff]  }
 0x243   :  { %2434 = vmatpush2.bf16.msra.mxu0 %v4700_v4  ;;  %2475 = vmatpush2.bf16.msra.mxu1 %v4790_v18  ;;  %v4769_v4 = vld [vmem:[#allocation4 + $0x1a8] ss:$16 sps:$4 sm:$0xff]   ;;  %v4795_v18 = vld [vmem:[#allocation4 + $0x12c] ss:$16 sps:$4 sm:$0xff]  }
 0x244   :  { %2435 = vmatprep.subr.bf16.mxu0 %v4705_v5  ;;  %2476 = vmatprep.subr.bf16.mxu1 %v4798_v19  ;;  %v4777_v5 = vld [vmem:[#allocation4 + $0x18c] ss:$16 sps:$4 sm:$0xff]  }
 0x247   :  { %2436 = vmatpush2.bf16.msra.mxu0 %v4703_v8  ;;  %2477 = vmatpush2.bf16.msra.mxu1 %v4796_v20  ;;  %v753_v8 = vrot.slane %v5354_v24, %v5314_v16 }
 0x248   :  { %2487 = vmatprep.subr.bf16.mxu0 %v4711_v11  ;;  %2528 = vmatprep.subr.bf16.mxu1 %v4804_v22  ;;  %v4781_v11 = vld [vmem:[#allocation4 + $0x168] ss:$16 sps:$4 sm:$0xff]  }
 0x249   :  { %v773_v14 = vrot.slane %v753_v8, %v5312_v58  ;;  %v4868_v8 = vld [vmem:[#allocation6 + $0x20] ss:$16 sps:$4 sm:$0xff]  }
 0x28a   :  { %v1452_v27 = vpop.f32.mrf.mxu0  ;;  %v1493_v28 = vpop.f32.mrf.mxu1 }
 0x28b   :  { %v1453_v29 = vadd.f32 %v1452_v27, %v765_v9  ;;  %v4801_v27 = vld [vmem:[#allocation4 + $0x10c] ss:$16 sps:$4 sm:$0xff]  }
 0x28c   :  { %v1454_v30 = vpop.f32.mrf.mxu0  ;;  %v1495_v31 = vpop.f32.mrf.mxu1 }
 0x28d   :  { %v1494_v32 = vadd.f32 %v1493_v28, %v1453_v29  ;;  %v1455_v33 = vadd.f32 %v1454_v30, %v769_v10 }
 0x28e   :  { %v1456_v34 = vpop.f32.mrf.mxu0  ;;  %v1497_v35 = vpop.f32.mrf.mxu1 }
 0x28f   :  { %vm1582_vm6 = vcmp.gt.f32.partialorder %v1494_v32, 0.0  ;;  %v1586_v36 = vmul.f32 0.01, %v1494_v32  ;;  %v1496_v38 = vadd.f32 %v1495_v31, %v1455_v33  ;;  %v4799_v33 = vld [vmem:[#allocation4 + $0x108] ss:$16 sps:$4 sm:$0xff]  }
 0x290   :  { %v1457_v39 = vpop.f32.mrf.mxu0  ;;  %v1498_v40 = vpop.f32.mrf.mxu1 }
 0x291   :  { %vm1583_vm7 = vcmp.gt.f32.partialorder %v1496_v38, 0.0  ;;  %v1587_v41 = vmul.f32 0.01, %v1496_v38  ;;  %v1590_v42 = vsel %vm1582_vm6, %v1494_v32, %v1586_v36  ;;  %v4802_v39 = vld [vmem:[#allocation4 + $0x2e8] ss:$16 sps:$4 sm:$0xff]  }
 0x292   :  { %v5362_v45 = vpack.c.bf16 %v1590_v42, %v1590_v42  ;;  %v4805_v42 = vld [vmem:[#allocation4 + $0x2c8] ss:$16 sps:$4 sm:$0xff]  }
 0x293   :  { %v1591_v43 = vsel %vm1583_vm7, %v1496_v38, %v1587_v41  ;;  %v4807_v41 = vld [vmem:[#allocation4 + $0x2cc] ss:$16 sps:$4 sm:$0xff]  }
 0x294   :  { %v1595_v44 = vpack.c.bf16 %v1591_v43, %v1591_v43  ;;  %v4810_v43 = vld [vmem:[#allocation4 + $0x2ac] ss:$16 sps:$4 sm:$0xff]  }
 0x296   :  { %2437 = vmatprep.mubr.bf16.mxu0 %v1595_v44 }
 0x297   :  { %2438 = vmatmul.mubr.bf16.vlgmr.msra.gmra.mxu0 %v5362_v45 }
 0x298   :  { %2488 = vmatpush1.bf16.msra.mxu0 %v4709_v21  ;;  %2519 = vmatprep.mubr.bf16.mxu0 %v1595_v44  ;;  %v4808_v44 = vld [vmem:[#allocation4 + $0x2a8] ss:$16 sps:$4 sm:$0xff]   ;;  %v4813_v21 = vld [vmem:[#allocation4 + $0x28c] ss:$16 sps:$4 sm:$0xff]  }
 0x299   :  { %2489 = vmatprep.subr.bf16.mxu0 %v4717_v46  ;;  %v4850_v46 = vld [vmem:[#allocation6 + $0xe0] ss:$16 sps:$4 sm:$0xff]  }
 0x29c   :  { %2490 = vmatpush1.bf16.msra.mxu0 %v4715_v47  ;;  %v4852_v47 = vld [vmem:[#allocation6 + $0xe4] ss:$16 sps:$4 sm:$0xff]  }
 0x29d   :  { %2491 = vmatprep.subr.bf16.mxu0 %v4723_v48  ;;  %v4855_v48 = vld [vmem:[#allocation6 + $0xc4] ss:$16 sps:$4 sm:$0xff]  }
 0x2a0   :  { %2492 = vmatpush1.bf16.msra.mxu0 %v4721_v49  ;;  %v4811_v49 = vld [vmem:[#allocation4 + $0x288] ss:$16 sps:$4 sm:$0xff]  }
 0x2a1   :  { %2493 = vmatprep.subr.bf16.mxu0 %v4729_v50  ;;  %v4853_v50 = vld [vmem:[#allocation6 + $0xc0] ss:$16 sps:$4 sm:$0xff]  }
 0x2a4   :  { %2494 = vmatpush1.bf16.msra.mxu0 %v4727_v51  ;;  %v4816_v51 = vld [vmem:[#allocation4 + $0x26c] ss:$16 sps:$4 sm:$0xff]  }
 0x2a5   :  { %2495 = vmatprep.subr.bf16.mxu0 %v4735_v52  ;;  %v4814_v52 = vld [vmem:[#allocation4 + $0x268] ss:$16 sps:$4 sm:$0xff]  }
 0x2a8   :  { %2496 = vmatpush1.bf16.msra.mxu0 %v4733_v53  ;;  %v4856_v53 = vld [vmem:[#allocation6 + $0xa0] ss:$16 sps:$4 sm:$0xff]  }
 0x2a9   :  { %2497 = vmatprep.subr.bf16.mxu0 %v4741_v54  ;;  %v4819_v54 = vld [vmem:[#allocation4 + $0x24c] ss:$16 sps:$4 sm:$0xff]  }
 0x2ac   :  { %2498 = vmatpush1.bf16.msra.mxu0 %v4739_v55  ;;  %v4861_v55 = vld [vmem:[#allocation6 + $0x84] ss:$16 sps:$4 sm:$0xff]  }
 0x2ad   :  { %2499 = vmatprep.subr.bf16.mxu0 %v4747_v56  ;;  %v4817_v56 = vld [vmem:[#allocation4 + $0x248] ss:$16 sps:$4 sm:$0xff]  }
 0x2b0   :  { %2500 = vmatpush1.bf16.msra.mxu0 %v4745_v57  ;;  %v4859_v57 = vld [vmem:[#allocation6 + $0x80] ss:$16 sps:$4 sm:$0xff]  }
 0x2b1   :  { %2501 = vmatprep.subr.bf16.mxu0 %v4753_v59  ;;  %v4822_v59 = vld [vmem:[#allocation4 + $0x22c] ss:$16 sps:$4 sm:$0xff]  }
 0x2b4   :  { %2502 = vmatpush1.bf16.msra.mxu0 %v4751_v60  ;;  %v4864_v60 = vld [vmem:[#allocation6 + $0x64] ss:$16 sps:$4 sm:$0xff]  }
 0x2b5   :  { %2503 = vmatprep.subr.bf16.mxu0 %v4759_v62  ;;  %v4820_v62 = vld [vmem:[#allocation4 + $0x228] ss:$16 sps:$4 sm:$0xff]  }
 0x2b8   :  { %2504 = vmatpush2.bf16.msra.mxu0 %v4757_v0  ;;  %v4862_v0 = vld [vmem:[#allocation6 + $0x60] ss:$16 sps:$4 sm:$0xff]  }
 0x2b9   :  { %2505 = vmatprep.subr.bf16.mxu0 %v4765_v1  ;;  %v4825_v1 = vld [vmem:[#allocation4 + $0x20c] ss:$16 sps:$4 sm:$0xff]  }
 0x2bc   :  { %2506 = vmatpush2.bf16.msra.mxu0 %v4763_v2  ;;  %v4867_v2 = vld [vmem:[#allocation6 + $0x44] ss:$16 sps:$4 sm:$0xff]  }
 0x2bd   :  { %2507 = vmatprep.subr.bf16.mxu0 %v4771_v3  ;;  %v4823_v3 = vld [vmem:[#allocation4 + $0x208] ss:$16 sps:$4 sm:$0xff]  }
 0x2c0   :  { %2508 = vmatpush2.bf16.msra.mxu0 %v4769_v4  ;;  %v4865_v4 = vld [vmem:[#allocation6 + $0x40] ss:$16 sps:$4 sm:$0xff]  }
 0x2c1   :  { %2509 = vmatprep.subr.bf16.mxu0 %v4777_v5  ;;  %v4828_v5 = vld [vmem:[#allocation4 + $0x3ec] ss:$16 sps:$4 sm:$0xff]  }
 0x2c4   :  { %2510 = vmatpush2.bf16.msra.mxu0 %v4775_v6  ;;  %v4870_v6 = vld [vmem:[#allocation6 + $0x24] ss:$16 sps:$4 sm:$0xff]  }
 0x2c5   :  { %2511 = vmatprep.subr.bf16.mxu0 %v4783_v7  ;;  %v4826_v7 = vld [vmem:[#allocation4 + $0x3e8] ss:$16 sps:$4 sm:$0xff]  }
 0x2c8   :  { %2512 = vmatpush2.bf16.msra.mxu0 %v4781_v11  ;;  %v4831_v11 = vld [vmem:[#allocation4 + $0x3cc] ss:$16 sps:$4 sm:$0xff]  }
 0x2c9   :  { %2513 = vmatprep.subr.bf16.mxu0 %v4789_v12  ;;  %v4873_v12 = vld [vmem:[#allocation6 + $0x4] ss:$16 sps:$4 sm:$0xff]  }
 0x2ca   :  { %v1534_v19 = vpop.f32.mrf.mxu0  ;;  %v1575_v20 = vpop.f32.mrf.mxu1 }
 0x2cb   :  { %v1535_v22 = vadd.f32 %v1534_v19, %v773_v14  ;;  %v4871_v14 = vld [vmem:[#allocation6] ss:$16 sps:$4 sm:$0xff]  }
 0x2cc   :  { %v1536_v23 = vpop.f32.mrf.mxu0  ;;  %v1577_v25 = vpop.f32.mrf.mxu1  ;;  %2514 = vmatpush2.bf16.msra.mxu0 %v4787_v15  ;;  %v4834_v15 = vld [vmem:[#allocation4 + $0x3ac] ss:$16 sps:$4 sm:$0xff]   ;;  %v4874_v19 = vld [vmem:[#allocation6 + $0x1e0] ss:$16 sps:$4 sm:$0xff]  }
 0x2cd   :  { %v1576_v9 = vadd.f32 %v1575_v20, %v1535_v22  ;;  %v1537_v10 = vadd.f32 %v1536_v23, %v777_v17  ;;  %2515 = vmatprep.subr.bf16.mxu0 %v4795_v18  ;;  %v4876_v17 = vld [vmem:[#allocation6 + $0x1e4] ss:$16 sps:$4 sm:$0xff]   ;;  %v4832_v18 = vld [vmem:[#allocation4 + $0x3a8] ss:$16 sps:$4 sm:$0xff]   ;;  %v4837_v20 = vld [vmem:[#allocation4 + $0x38c] ss:$16 sps:$4 sm:$0xff]  }
 0x2ce   :  { %v1538_v24 = vpop.f32.mrf.mxu0  ;;  %v1579_v28 = vpop.f32.mrf.mxu1  ;;  %v4879_v22 = vld [vmem:[#allocation6 + $0x1c4] ss:$16 sps:$4 sm:$0xff]   ;;  %v4835_v23 = vld [vmem:[#allocation4 + $0x388] ss:$16 sps:$4 sm:$0xff]  }
 0x2cf   :  { %vm1584_vm8 = vcmp.gt.f32.partialorder %v1576_v9, 0.0  ;;  %v1588_v29 = vmul.f32 0.01, %v1576_v9  ;;  %v1578_v30 = vadd.f32 %v1577_v25, %v1537_v10  ;;  %v4877_v25 = vld [vmem:[#allocation6 + $0x1c0] ss:$16 sps:$4 sm:$0xff]  }
 0x2d0   :  { %v1539_v31 = vpop.f32.mrf.mxu0  ;;  %v1580_v32 = vpop.f32.mrf.mxu1  ;;  %2516 = vmatpush2.bf16.msra.mxu0 %v4793_v26  ;;  %v4840_v26 = vld [vmem:[#allocation4 + $0x36c] ss:$16 sps:$4 sm:$0xff]   ;;  %v4838_v10 = vld [vmem:[#allocation4 + $0x368] ss:$16 sps:$4 sm:$0xff]   ;;  %v4885_v28 = vld [vmem:[#allocation6 + $0x184] ss:$16 sps:$4 sm:$0xff]  }
 0x2d1   :  { %vm1585_vm9 = vcmp.gt.f32.partialorder %v1578_v30, 0.0  ;;  %v1589_v34 = vmul.f32 0.01, %v1578_v30  ;;  %2517 = vmatprep.subr.bf16.mxu0 %v4801_v27  ;;  %v1592_v35 = vsel %vm1584_vm8, %v1576_v9, %v1588_v29  ;;  %v4882_v9 = vld [vmem:[#allocation6 + $0x1a4] ss:$16 sps:$4 sm:$0xff]  }
 0x2d2   :  { %v5371_v40 = vpack.c.bf16 %v1592_v35, %v1592_v35  ;;  %v4880_v27 = vld [vmem:[#allocation6 + $0x1a0] ss:$16 sps:$4 sm:$0xff]   ;;  %v4843_v24 = vld [vmem:[#allocation4 + $0x34c] ss:$16 sps:$4 sm:$0xff]   ;;  %v4841_v29 = vld [vmem:[#allocation4 + $0x348] ss:$16 sps:$4 sm:$0xff]  }
 0x2d3   :  { %v1593_v36 = vsel %vm1585_vm9, %v1578_v30, %v1589_v34  ;;  %v4883_v30 = vld [vmem:[#allocation6 + $0x180] ss:$16 sps:$4 sm:$0xff]   ;;  %v4846_v31 = vld [vmem:[#allocation4 + $0x32c] ss:$16 sps:$4 sm:$0xff]   ;;  %v4888_v32 = vld [vmem:[#allocation6 + $0x164] ss:$16 sps:$4 sm:$0xff]  }
 0x2d4   :  { %2518 = vmatpush2.bf16.msra.mxu0 %v4799_v33  ;;  %v1597_v38 = vpack.c.bf16 %v1593_v36, %v1593_v36  ;;  %v4844_v33 = vld [vmem:[#allocation4 + $0x328] ss:$16 sps:$4 sm:$0xff]   ;;  %v4886_v34 = vld [vmem:[#allocation6 + $0x160] ss:$16 sps:$4 sm:$0xff]   ;;  %v4849_v35 = vld [vmem:[#allocation4 + $0x30c] ss:$16 sps:$4 sm:$0xff]  }
 0x2d5   :  { %3392 = vmatprep.subr.bf16.mxu0 %v4852_v47  ;;  %v4891_v36 = vld [vmem:[#allocation6 + $0x144] ss:$16 sps:$4 sm:$0xff]   ;;  %v4903_v47 = vld [vmem:[#allocation6 + $0xec] ss:$16 sps:$4 sm:$0xff]  }
 0x2d6   :  { %2478 = vmatprep.mubr.bf16.mxu1 %v1597_v38 }
 0x2d7   :  { %2479 = vmatmul.mubr.bf16.vlgmr.msra.gmra.mxu1 %v5371_v40  ;;  %2520 = vmatmul.mubr.bf16.vlgmr.msra.gmra.mxu0 %v5362_v45  ;;  %v4858_v45 = vld [vmem:[#allocation6 + $0xa4] ss:$16 sps:$4 sm:$0xff]  }
 0x2d8   :  { %2529 = vmatpush1.bf16.msra.mxu1 %v4802_v39  ;;  %2560 = vmatprep.mubr.bf16.mxu1 %v1597_v38  ;;  %v4847_v38 = vld [vmem:[#allocation4 + $0x308] ss:$16 sps:$4 sm:$0xff]   ;;  %v4889_v39 = vld [vmem:[#allocation6 + $0x140] ss:$16 sps:$4 sm:$0xff]  }
 0x2d9   :  { %2530 = vmatprep.subr.bf16.mxu1 %v4807_v41  ;;  %3393 = vmatpush1.bf16.msra.mxu0 %v4850_v46  ;;  %v4894_v41 = vld [vmem:[#allocation6 + $0x124] ss:$16 sps:$4 sm:$0xff]  }
 0x2da   :  { %3394 = vmatprep.subr.bf16.mxu0 %v4855_v48  ;;  %v4900_v46 = vld [vmem:[#allocation6 + $0x2e4] ss:$16 sps:$4 sm:$0xff]   ;;  %v4904_v48 = vld [vmem:[#allocation6 + $0x2c0] ss:$16 sps:$4 sm:$0xff]  }
 0x2dc   :  { %2531 = vmatpush1.bf16.msra.mxu1 %v4805_v42  ;;  %v4892_v42 = vld [vmem:[#allocation6 + $0x120] ss:$16 sps:$4 sm:$0xff]  }
 0x2dd   :  { %2532 = vmatprep.subr.bf16.mxu1 %v4810_v43  ;;  %3395 = vmatpush1.bf16.msra.mxu0 %v4853_v50  ;;  %v4897_v43 = vld [vmem:[#allocation6 + $0x104] ss:$16 sps:$4 sm:$0xff]   ;;  %v4910_v50 = vld [vmem:[#allocation6 + $0x2a0] ss:$16 sps:$4 sm:$0xff]  }
 0x2de   :  { %3396 = vmatprep.subr.bf16.mxu0 %v4858_v45  ;;  %v4918_v45 = vld [vmem:[#allocation6 + $0x284] ss:$16 sps:$4 sm:$0xff]  }
 0x2e0   :  { %2533 = vmatpush1.bf16.msra.mxu1 %v4808_v44  ;;  %v4895_v44 = vld [vmem:[#allocation6 + $0x100] ss:$16 sps:$4 sm:$0xff]  }
 0x2e1   :  { %2534 = vmatprep.subr.bf16.mxu1 %v4813_v21  ;;  %3397 = vmatpush1.bf16.msra.mxu0 %v4856_v53  ;;  %v4898_v21 = vld [vmem:[#allocation6 + $0x2e0] ss:$16 sps:$4 sm:$0xff]   ;;  %v4924_v53 = vld [vmem:[#allocation6 + $0x264] ss:$16 sps:$4 sm:$0xff]  }
 0x2e2   :  { %3398 = vmatprep.subr.bf16.mxu0 %v4861_v55  ;;  %v4930_v55 = vld [vmem:[#allocation6 + $0x244] ss:$16 sps:$4 sm:$0xff]  }
 0x2e4   :  { %2535 = vmatpush1.bf16.msra.mxu1 %v4811_v49  ;;  %v4906_v49 = vld [vmem:[#allocation6 + $0x2c4] ss:$16 sps:$4 sm:$0xff]  }
 0x2e5   :  { %2536 = vmatprep.subr.bf16.mxu1 %v4816_v51  ;;  %3399 = vmatpush1.bf16.msra.mxu0 %v4859_v57  ;;  %v4916_v51 = vld [vmem:[#allocation6 + $0x280] ss:$16 sps:$4 sm:$0xff]   ;;  %v4936_v57 = vld [vmem:[#allocation6 + $0x224] ss:$16 sps:$4 sm:$0xff]  }
 0x2e6   :  { %3400 = vmatprep.subr.bf16.mxu0 %v4864_v60  ;;  %v4942_v60 = vld [vmem:[#allocation6 + $0x204] ss:$16 sps:$4 sm:$0xff]  }
 0x2e8   :  { %2537 = vmatpush1.bf16.msra.mxu1 %v4814_v52  ;;  %v4922_v52 = vld [vmem:[#allocation6 + $0x260] ss:$16 sps:$4 sm:$0xff]  }
 0x2e9   :  { %2538 = vmatprep.subr.bf16.mxu1 %v4819_v54  ;;  %3401 = vmatpush1.bf16.msra.mxu0 %v4862_v0  ;;  %v4928_v54 = vld [vmem:[#allocation6 + $0x240] ss:$16 sps:$4 sm:$0xff]   ;;  %v4948_v0 = vld [vmem:[#allocation6 + $0x3e4] ss:$16 sps:$4 sm:$0xff]  }
 0x2ea   :  { %3402 = vmatprep.subr.bf16.mxu0 %v4867_v2  ;;  %v4954_v2 = vld [vmem:[#allocation6 + $0x3c4] ss:$16 sps:$4 sm:$0xff]  }
 0x2ec   :  { %2539 = vmatpush1.bf16.msra.mxu1 %v4817_v56  ;;  %v4934_v56 = vld [vmem:[#allocation6 + $0x220] ss:$16 sps:$4 sm:$0xff]  }
 0x2ed   :  { %2540 = vmatprep.subr.bf16.mxu1 %v4822_v59  ;;  %3403 = vmatpush1.bf16.msra.mxu0 %v4865_v4  ;;  %v4940_v59 = vld [vmem:[#allocation6 + $0x200] ss:$16 sps:$4 sm:$0xff]   ;;  %v4960_v4 = vld [vmem:[#allocation6 + $0x3a4] ss:$16 sps:$4 sm:$0xff]  }
 0x2ee   :  { %3404 = vmatprep.subr.bf16.mxu0 %v4870_v6  ;;  %v4966_v6 = vld [vmem:[#allocation6 + $0x384] ss:$16 sps:$4 sm:$0xff]  }
 0x2f0   :  { %2541 = vmatpush1.bf16.msra.mxu1 %v4820_v62  ;;  %v4946_v62 = vld [vmem:[#allocation6 + $0x3e0] ss:$16 sps:$4 sm:$0xff]  }
 0x2f1   :  { %2542 = vmatprep.subr.bf16.mxu1 %v4825_v1  ;;  %3405 = vmatpush1.bf16.msra.mxu0 %v4868_v8  ;;  %v4952_v1 = vld [vmem:[#allocation6 + $0x3c0] ss:$16 sps:$4 sm:$0xff]   ;;  %v4972_v8 = vld [vmem:[#allocation6 + $0x364] ss:$16 sps:$4 sm:$0xff]  }
 0x2f2   :  { %3406 = vmatprep.subr.bf16.mxu0 %v4873_v12  ;;  %v4978_v12 = vld [vmem:[#allocation6 + $0x344] ss:$16 sps:$4 sm:$0xff]  }
 0x2f4   :  { %2543 = vmatpush1.bf16.msra.mxu1 %v4823_v3  ;;  %v4958_v3 = vld [vmem:[#allocation6 + $0x3a0] ss:$16 sps:$4 sm:$0xff]  }
 0x2f5   :  { %2544 = vmatprep.subr.bf16.mxu1 %v4828_v5  ;;  %3407 = vmatpush1.bf16.msra.mxu0 %v4871_v14  ;;  %v4964_v5 = vld [vmem:[#allocation6 + $0x380] ss:$16 sps:$4 sm:$0xff]   ;;  %v4984_v14 = vld [vmem:[#allocation6 + $0x324] ss:$16 sps:$4 sm:$0xff]  }
 0x2f6   :  { %3408 = vmatprep.subr.bf16.mxu0 %v4876_v17 }
 0x2f8   :  { %2545 = vmatpush2.bf16.msra.mxu1 %v4826_v7  ;;  %v4970_v7 = vld [vmem:[#allocation6 + $0x360] ss:$16 sps:$4 sm:$0xff]  }
 0x2f9   :  { %2546 = vmatprep.subr.bf16.mxu1 %v4831_v11  ;;  %3409 = vmatpush2.bf16.msra.mxu0 %v4874_v19  ;;  %v4976_v11 = vld [vmem:[#allocation6 + $0x340] ss:$16 sps:$4 sm:$0xff]   ;;  %v4990_v19 = vld [vmem:[#allocation6 + $0x304] ss:$16 sps:$4 sm:$0xff]  }
 0x2fa   :  { %3410 = vmatprep.subr.bf16.mxu0 %v4879_v22 }
 0x2fc   :  { %2547 = vmatpush2.bf16.msra.mxu1 %v4829_v13 }
 0x2fd   :  { %2548 = vmatprep.subr.bf16.mxu1 %v4834_v15  ;;  %3411 = vmatpush2.bf16.msra.mxu0 %v4877_v25  ;;  %v4982_v15 = vld [vmem:[#allocation6 + $0x320] ss:$16 sps:$4 sm:$0xff]  }
 0x2fe   :  { %3412 = vmatprep.subr.bf16.mxu0 %v4882_v9  ;;  %v1726_v25 = vld [vmem:[%s5539_s9] sm:$0xf] }
 0x300   :  { %2549 = vmatpush2.bf16.msra.mxu1 %v4832_v18 }
 0x301   :  { %2550 = vmatprep.subr.bf16.mxu1 %v4837_v20  ;;  %3413 = vmatpush2.bf16.msra.mxu0 %v4880_v27  ;;  %v4988_v20 = vld [vmem:[#allocation6 + $0x300] ss:$16 sps:$4 sm:$0xff]  }
 0x302   :  { %3414 = vmatprep.subr.bf16.mxu0 %v4885_v28 }
 0x304   :  { %2551 = vmatpush2.bf16.msra.mxu1 %v4835_v23  ;;  %v4996_v23 = vld [vmem:[#allocation6 + $0x2ec] ss:$16 sps:$4 sm:$0xff]  }
 0x305   :  { %2552 = vmatprep.subr.bf16.mxu1 %v4840_v26  ;;  %3415 = vmatpush2.bf16.msra.mxu0 %v4883_v30  ;;  %v5379_v26 = vunpack.c.l.bf16 %v1726_v25 }
 0x306   :  { %3416 = vmatprep.subr.bf16.mxu0 %v4888_v32 }
 0x307   :  { %v1732_v9 = vrot.slane %v5379_v26, %v5312_v58 }
 0x308   :  { %2553 = vmatpush2.bf16.msra.mxu1 %v4838_v10  ;;  %v1736_v10 = vrot.slane %v5379_v26, %v5318_v63 }
 0x309   :  { %2554 = vmatprep.subr.bf16.mxu1 %v4843_v24  ;;  %3417 = vmatpush2.bf16.msra.mxu0 %v4886_v34  ;;  %v1752_v27 = vrot.slane %v1732_v9, %v5312_v58 }
 0x30a   :  { %3418 = vmatprep.subr.bf16.mxu0 %v4891_v36  ;;  %v1756_v24 = vrot.slane %v1736_v10, %v5312_v58 }
 0x30c   :  { %2555 = vmatpush2.bf16.msra.mxu1 %v4841_v29 }
 0x30d   :  { %2556 = vmatprep.subr.bf16.mxu1 %v4846_v31  ;;  %3419 = vmatpush2.bf16.msra.mxu0 %v4889_v39 }
 0x30e   :  { %3420 = vmatprep.subr.bf16.mxu0 %v4894_v41 }
 0x310   :  { %2557 = vmatpush2.bf16.msra.mxu1 %v4844_v33 }
 0x311   :  { %2558 = vmatprep.subr.bf16.mxu1 %v4849_v35  ;;  %3421 = vmatpush2.bf16.msra.mxu0 %v4892_v42 }
 0x312   :  { %3422 = vmatprep.subr.bf16.mxu0 %v4897_v43 }
 0x314   :  { %2559 = vmatpush2.bf16.msra.mxu1 %v4847_v38 }
 0x315   :  { %3423 = vmatpush2.bf16.msra.mxu0 %v4895_v44  ;;  %3433 = vmatprep.subr.bf16.mxu1 %v4900_v46 }
 0x316   :  { %3474 = vmatprep.subr.bf16.mxu0 %v4903_v47  ;;  %v4901_v47 = vld [vmem:[#allocation6 + $0xe8] ss:$16 sps:$4 sm:$0xff]  }
 0x317   :  { %2561 = vmatmul.mubr.bf16.vlgmr.msra.gmra.mxu1 %v5371_v40  ;;  %v4912_v40 = vld [vmem:[#allocation6 + $0x2a4] ss:$16 sps:$4 sm:$0xff]  }
 0x318   :  { %3434 = vmatpush1.bf16.msra.mxu1 %v4898_v21 }
 0x319   :  { %3435 = vmatprep.subr.bf16.mxu1 %v4906_v49  ;;  %v4909_v49 = vld [vmem:[#allocation6 + $0xcc] ss:$16 sps:$4 sm:$0xff]  }
 0x31c   :  { %3436 = vmatpush1.bf16.msra.mxu1 %v4904_v48 }
 0x31d   :  { %3437 = vmatprep.subr.bf16.mxu1 %v4912_v40  ;;  %v4915_v40 = vld [vmem:[#allocation6 + $0xac] ss:$16 sps:$4 sm:$0xff]  }
 0x320   :  { %3438 = vmatpush1.bf16.msra.mxu1 %v4910_v50  ;;  %v4907_v50 = vld [vmem:[#allocation6 + $0xc8] ss:$16 sps:$4 sm:$0xff]  }
 0x321   :  { %3439 = vmatprep.subr.bf16.mxu1 %v4918_v45  ;;  %v4921_v45 = vld [vmem:[#allocation6 + $0x8c] ss:$16 sps:$4 sm:$0xff]  }
 0x324   :  { %3440 = vmatpush1.bf16.msra.mxu1 %v4916_v51  ;;  %v4913_v51 = vld [vmem:[#allocation6 + $0xa8] ss:$16 sps:$4 sm:$0xff]  }
 0x325   :  { %3441 = vmatprep.subr.bf16.mxu1 %v4924_v53  ;;  %v4927_v53 = vld [vmem:[#allocation6 + $0x6c] ss:$16 sps:$4 sm:$0xff]  }
 0x328   :  { %3442 = vmatpush1.bf16.msra.mxu1 %v4922_v52  ;;  %v4919_v52 = vld [vmem:[#allocation6 + $0x88] ss:$16 sps:$4 sm:$0xff]  }
 0x329   :  { %3443 = vmatprep.subr.bf16.mxu1 %v4930_v55  ;;  %v4933_v55 = vld [vmem:[#allocation6 + $0x4c] ss:$16 sps:$4 sm:$0xff]  }
 0x32c   :  { %3444 = vmatpush1.bf16.msra.mxu1 %v4928_v54  ;;  %v4925_v54 = vld [vmem:[#allocation6 + $0x68] ss:$16 sps:$4 sm:$0xff]  }
 0x32d   :  { %3445 = vmatprep.subr.bf16.mxu1 %v4936_v57  ;;  %v4939_v57 = vld [vmem:[#allocation6 + $0x2c] ss:$16 sps:$4 sm:$0xff]  }
 0x330   :  { %3446 = vmatpush1.bf16.msra.mxu1 %v4934_v56  ;;  %v4931_v56 = vld [vmem:[#allocation6 + $0x48] ss:$16 sps:$4 sm:$0xff]  }
 0x331   :  { %3447 = vmatprep.subr.bf16.mxu1 %v4942_v60  ;;  %v4945_v60 = vld [vmem:[#allocation6 + $0xc] ss:$16 sps:$4 sm:$0xff]  }
 0x334   :  { %3448 = vmatpush1.bf16.msra.mxu1 %v4940_v59  ;;  %v4937_v59 = vld [vmem:[#allocation6 + $0x28] ss:$16 sps:$4 sm:$0xff]  }
 0x335   :  { %3449 = vmatprep.subr.bf16.mxu1 %v4948_v0  ;;  %v4951_v0 = vld [vmem:[#allocation6 + $0x1ec] ss:$16 sps:$4 sm:$0xff]  }
 0x338   :  { %3450 = vmatpush2.bf16.msra.mxu1 %v4946_v62  ;;  %v4943_v62 = vld [vmem:[#allocation6 + $0x8] ss:$16 sps:$4 sm:$0xff]  }
 0x339   :  { %3451 = vmatprep.subr.bf16.mxu1 %v4954_v2  ;;  %v4957_v2 = vld [vmem:[#allocation6 + $0x1cc] ss:$16 sps:$4 sm:$0xff]  }
 0x33c   :  { %3452 = vmatpush2.bf16.msra.mxu1 %v4952_v1  ;;  %v4949_v1 = vld [vmem:[#allocation6 + $0x1e8] ss:$16 sps:$4 sm:$0xff]  }
 0x33d   :  { %3453 = vmatprep.subr.bf16.mxu1 %v4960_v4  ;;  %v4963_v4 = vld [vmem:[#allocation6 + $0x1ac] ss:$16 sps:$4 sm:$0xff]  }
 0x340   :  { %3454 = vmatpush2.bf16.msra.mxu1 %v4958_v3  ;;  %v4955_v3 = vld [vmem:[#allocation6 + $0x1c8] ss:$16 sps:$4 sm:$0xff]  }
 0x341   :  { %3455 = vmatprep.subr.bf16.mxu1 %v4966_v6  ;;  %v4969_v6 = vld [vmem:[#allocation6 + $0x18c] ss:$16 sps:$4 sm:$0xff]  }
 0x344   :  { %3456 = vmatpush2.bf16.msra.mxu1 %v4964_v5  ;;  %v4961_v5 = vld [vmem:[#allocation6 + $0x1a8] ss:$16 sps:$4 sm:$0xff]  }
 0x345   :  { %3457 = vmatprep.subr.bf16.mxu1 %v4972_v8  ;;  %v4975_v8 = vld [vmem:[#allocation6 + $0x16c] ss:$16 sps:$4 sm:$0xff]  }
 0x348   :  { %3458 = vmatpush2.bf16.msra.mxu1 %v4970_v7  ;;  %v4967_v7 = vld [vmem:[#allocation6 + $0x188] ss:$16 sps:$4 sm:$0xff]  }
 0x349   :  { %3459 = vmatprep.subr.bf16.mxu1 %v4978_v12  ;;  %v4973_v12 = vld [vmem:[#allocation6 + $0x168] ss:$16 sps:$4 sm:$0xff]  }
 0x34c   :  { %3460 = vmatpush2.bf16.msra.mxu1 %v4976_v11  ;;  %v1740_v11 = vrot.slane %v5379_v26, %v5314_v16 }
 0x34d   :  { %3461 = vmatprep.subr.bf16.mxu1 %v4984_v14  ;;  %v4981_v14 = vld [vmem:[#allocation6 + $0x14c] ss:$16 sps:$4 sm:$0xff]  }
 0x350   :  { %3462 = vmatpush2.bf16.msra.mxu1 %v4982_v15  ;;  %v1760_v15 = vrot.slane %v1740_v11, %v5312_v58  ;;  %v5032_v11 = vld [vmem:[#allocation6 + $0x36c] ss:$16 sps:$4 sm:$0xff]  }
 0x351   :  { %3463 = vmatprep.subr.bf16.mxu1 %v4990_v19  ;;  %v4987_v19 = vld [vmem:[#allocation6 + $0x12c] ss:$16 sps:$4 sm:$0xff]  }
 0x354   :  { %3464 = vmatpush2.bf16.msra.mxu1 %v4988_v20 }
 0x355   :  { %3515 = vmatprep.subr.bf16.mxu1 %v4996_v23  ;;  %v4985_v23 = vld [vmem:[#allocation6 + $0x128] ss:$16 sps:$4 sm:$0xff]  }
 0x357   :  { %v2439_v13 = vpop.f32.mrf.mxu0 }
 0x358   :  { %v2440_v28 = vadd.f32 %v2439_v13, %v1752_v27  ;;  %v1744_v13 = vrot.slane %v5379_v26, %v5320_v37  ;;  %v4993_v26 = vld [vmem:[#allocation6 + $0x10c] ss:$16 sps:$4 sm:$0xff]  }
 0x359   :  { %v2441_v17 = vpop.f32.mrf.mxu0 }
 0x35a   :  { %v2442_v31 = vadd.f32 %v2441_v17, %v1756_v24  ;;  %v4979_v17 = vld [vmem:[#allocation6 + $0x148] ss:$16 sps:$4 sm:$0xff]  }
 0x35b   :  { %v2443_v18 = vpop.f32.mrf.mxu0 }
 0x35c   :  { %v1764_v18 = vrot.slane %v1744_v13, %v5312_v58  ;;  %v5035_v13 = vld [vmem:[#allocation6 + $0x34c] ss:$16 sps:$4 sm:$0xff]  }
 0x35d   :  { %v2444_v22 = vpop.f32.mrf.mxu0 }
 0x397   :  { %v2480_v29 = vpop.f32.mrf.mxu1  ;;  %v5387_v30 = vpop.f32.mrf.mxu0 }
 0x398   :  { %v2481_v32 = vadd.f32 %v2480_v29, %v2440_v28  ;;  %v2522_v20 = vadd.f32 %v5387_v30, %v1760_v15  ;;  %v4991_v29 = vld [vmem:[#allocation6 + $0x108] ss:$16 sps:$4 sm:$0xff]   ;;  %v5038_v15 = vld [vmem:[#allocation6 + $0x32c] ss:$16 sps:$4 sm:$0xff]  }
 0x399   :  { %v2482_v33 = vpop.f32.mrf.mxu1  ;;  %v5389_v34 = vpop.f32.mrf.mxu0 }
 0x39a   :  { %vm2569_vm10 = vcmp.gt.f32.partialorder %v2481_v32, 0.0  ;;  %v2573_v35 = vmul.f32 0.01, %v2481_v32  ;;  %v2483_v36 = vadd.f32 %v2482_v33, %v2442_v31  ;;  %v2524_v25 = vadd.f32 %v5389_v34, %v1764_v18  ;;  %v5041_v18 = vld [vmem:[#allocation6 + $0x30c] ss:$16 sps:$4 sm:$0xff]  }
 0x39b   :  { %v2484_v38 = vpop.f32.mrf.mxu1  ;;  %v2525_v39 = vpop.f32.mrf.mxu0 }
 0x39c   :  { %vm2570_vm11 = vcmp.gt.f32.partialorder %v2483_v36, 0.0  ;;  %v2574_v41 = vmul.f32 0.01, %v2483_v36  ;;  %v2577_v42 = vsel %vm2569_vm10, %v2481_v32, %v2573_v35  ;;  %v4999_v38 = vld [vmem:[#allocation6 + $0x2cc] ss:$16 sps:$4 sm:$0xff]  }
 0x39d   :  { %v2485_v43 = vpop.f32.mrf.mxu1  ;;  %v2526_v44 = vpop.f32.mrf.mxu0  ;;  %v5391_v48 = vpack.c.bf16 %v2577_v42, %v2577_v42  ;;  %v4997_v39 = vld [vmem:[#allocation6 + $0x2c8] ss:$16 sps:$4 sm:$0xff]  }
 0x39e   :  { %v2578_v21 = vsel %vm2570_vm11, %v2483_v36, %v2574_v41  ;;  %v4994_v36 = vld [vmem:[#allocation6 + $0x2e8] ss:$16 sps:$4 sm:$0xff]   ;;  %v5002_v41 = vld [vmem:[#allocation6 + $0x2ac] ss:$16 sps:$4 sm:$0xff]  }
 0x39f   :  { %v2582_v46 = vpack.c.bf16 %v2578_v21, %v2578_v21  ;;  %v5000_v42 = vld [vmem:[#allocation6 + $0x2a8] ss:$16 sps:$4 sm:$0xff]   ;;  %v5005_v43 = vld [vmem:[#allocation6 + $0x28c] ss:$16 sps:$4 sm:$0xff]  }
 0x3a0   :  { %v5042_v44 = vld [vmem:[%s5542_s12 + $0x78] sm:$0xff]  }
 0x3a1   :  { %3424 = vmatprep.mubr.bf16.mxu0 %v2582_v46  ;;  %v5043_v21 = vld [vmem:[%s5542_s12 + $0x38] sm:$0xff]  }
 0x3a2   :  { %3425 = vmatmul.mubr.bf16.vlgmr.msra.gmra.mxu0 %v5391_v48 }
 0x3a3   :  { %3475 = vmatpush1.bf16.msra.mxu0 %v4901_v47  ;;  %3506 = vmatprep.mubr.bf16.mxu0 %v2582_v46  ;;  %v5044_v46 = vld [vmem:[%s5542_s12 + $0x70] sm:$0xff]   ;;  %v5003_v47 = vld [vmem:[#allocation6 + $0x288] ss:$16 sps:$4 sm:$0xff]  }
 0x3a4   :  { %3476 = vmatprep.subr.bf16.mxu0 %v4909_v49  ;;  %v5008_v49 = vld [vmem:[#allocation6 + $0x26c] ss:$16 sps:$4 sm:$0xff]  }
 0x3a7   :  { %3477 = vmatpush1.bf16.msra.mxu0 %v4907_v50  ;;  %v5046_v50 = vld [vmem:[%s5542_s12 + $0x68] sm:$0xff]  }
 0x3a8   :  { %3478 = vmatprep.subr.bf16.mxu0 %v4915_v40  ;;  %v5006_v40 = vld [vmem:[#allocation6 + $0x268] ss:$16 sps:$4 sm:$0xff]  }
 0x3ab   :  { %3479 = vmatpush1.bf16.msra.mxu0 %v4913_v51  ;;  %v5047_v51 = vld [vmem:[%s5542_s12 + $0x28] sm:$0xff]  }
 0x3ac   :  { %3480 = vmatprep.subr.bf16.mxu0 %v4921_v45  ;;  %v5011_v45 = vld [vmem:[#allocation6 + $0x24c] ss:$16 sps:$4 sm:$0xff]  }
 0x3af   :  { %3481 = vmatpush1.bf16.msra.mxu0 %v4919_v52  ;;  %v5048_v52 = vld [vmem:[%s5542_s12 + $0x60] sm:$0xff]  }
 0x3b0   :  { %3482 = vmatprep.subr.bf16.mxu0 %v4927_v53  ;;  %v5009_v53 = vld [vmem:[#allocation6 + $0x248] ss:$16 sps:$4 sm:$0xff]  }
 0x3b3   :  { %3483 = vmatpush1.bf16.msra.mxu0 %v4925_v54  ;;  %v5049_v54 = vld [vmem:[%s5542_s12 + $0x20] sm:$0xff]  }
 0x3b4   :  { %3484 = vmatprep.subr.bf16.mxu0 %v4933_v55  ;;  %v5014_v55 = vld [vmem:[#allocation6 + $0x22c] ss:$16 sps:$4 sm:$0xff]  }
 0x3b7   :  { %3485 = vmatpush1.bf16.msra.mxu0 %v4931_v56  ;;  %v5050_v56 = vld [vmem:[%s5542_s12 + $0x58] sm:$0xff]  }
 0x3b8   :  { %3486 = vmatprep.subr.bf16.mxu0 %v4939_v57  ;;  %v5012_v57 = vld [vmem:[#allocation6 + $0x228] ss:$16 sps:$4 sm:$0xff]  }
 0x3bb   :  { %3487 = vmatpush1.bf16.msra.mxu0 %v4937_v59  ;;  %v5051_v59 = vld [vmem:[%s5542_s12 + $0x18] sm:$0xff]  }
 0x3bc   :  { %3488 = vmatprep.subr.bf16.mxu0 %v4945_v60  ;;  %v5017_v60 = vld [vmem:[#allocation6 + $0x20c] ss:$16 sps:$4 sm:$0xff]  }
 0x3bf   :  { %3489 = vmatpush1.bf16.msra.mxu0 %v4943_v62  ;;  %v5052_v62 = vld [vmem:[%s5542_s12 + $0x50] sm:$0xff]  }
 0x3c0   :  { %3490 = vmatprep.subr.bf16.mxu0 %v4951_v0  ;;  %v5015_v0 = vld [vmem:[#allocation6 + $0x208] ss:$16 sps:$4 sm:$0xff]  }
 0x3c3   :  { %3491 = vmatpush2.bf16.msra.mxu0 %v4949_v1  ;;  %v5020_v1 = vld [vmem:[#allocation6 + $0x3ec] ss:$16 sps:$4 sm:$0xff]  }
 0x3c4   :  { %3492 = vmatprep.subr.bf16.mxu0 %v4957_v2  ;;  %v5018_v2 = vld [vmem:[#allocation6 + $0x3e8] ss:$16 sps:$4 sm:$0xff]  }
 0x3c7   :  { %3493 = vmatpush2.bf16.msra.mxu0 %v4955_v3  ;;  %v5023_v3 = vld [vmem:[#allocation6 + $0x3cc] ss:$16 sps:$4 sm:$0xff]  }
 0x3c8   :  { %3494 = vmatprep.subr.bf16.mxu0 %v4963_v4  ;;  %v5021_v4 = vld [vmem:[#allocation6 + $0x3c8] ss:$16 sps:$4 sm:$0xff]  }
 0x3cb   :  { %3495 = vmatpush2.bf16.msra.mxu0 %v4961_v5  ;;  %v5026_v5 = vld [vmem:[#allocation6 + $0x3ac] ss:$16 sps:$4 sm:$0xff]  }
 0x3cc   :  { %3496 = vmatprep.subr.bf16.mxu0 %v4969_v6  ;;  %v5024_v6 = vld [vmem:[#allocation6 + $0x3a8] ss:$16 sps:$4 sm:$0xff]  }
 0x3cf   :  { %3497 = vmatpush2.bf16.msra.mxu0 %v4967_v7  ;;  %v5029_v7 = vld [vmem:[#allocation6 + $0x38c] ss:$16 sps:$4 sm:$0xff]  }
 0x3d0   :  { %3498 = vmatprep.subr.bf16.mxu0 %v4975_v8  ;;  %v5027_v8 = vld [vmem:[#allocation6 + $0x388] ss:$16 sps:$4 sm:$0xff]  }
 0x3d3   :  { %3499 = vmatpush2.bf16.msra.mxu0 %v4973_v12  ;;  %v5030_v12 = vld [vmem:[#allocation6 + $0x368] ss:$16 sps:$4 sm:$0xff]  }
 0x3d4   :  { %3500 = vmatprep.subr.bf16.mxu0 %v4981_v14  ;;  %v5033_v14 = vld [vmem:[#allocation6 + $0x348] ss:$16 sps:$4 sm:$0xff]  }
 0x3d7   :  { %v2562_v22 = vpop.f32.mrf.mxu1  ;;  %3501 = vmatpush2.bf16.msra.mxu0 %v4979_v17  ;;  %v5036_v17 = vld [vmem:[#allocation6 + $0x328] ss:$16 sps:$4 sm:$0xff]  }
 0x3d8   :  { %v2563_v9 = vadd.f32 %v2562_v22, %v2522_v20  ;;  %3502 = vmatprep.subr.bf16.mxu0 %v4987_v19  ;;  %v5039_v19 = vld [vmem:[#allocation6 + $0x308] ss:$16 sps:$4 sm:$0xff]   ;;  %v5053_v20 = vld [vmem:[%s5542_s12 + $0x10] sm:$0xff]  }
 0x3d9   :  { %v2564_v10 = vpop.f32.mrf.mxu1  ;;  %v5054_v22 = vld [vmem:[%s5542_s12 + $0x48] sm:$0xff]  }
 0x3da   :  { %vm2571_vm12 = vcmp.gt.f32.partialorder %v2563_v9, 0.0  ;;  %v2575_v27 = vmul.f32 0.01, %v2563_v9  ;;  %v2565_v24 = vadd.f32 %v2564_v10, %v2524_v25  ;;  %v5056_v25 = vld [vmem:[%s5542_s12 + $0x40] sm:$0xff]   ;;  %v5059_v10 = vld [vmem:[%s5542_s12 + $0xb8] sm:$0xff]  }
 0x3db   :  { %v2566_v28 = vpop.f32.mrf.mxu1  ;;  %3503 = vmatpush2.bf16.msra.mxu0 %v4985_v23  ;;  %v5055_v23 = vld [vmem:[%s5542_s12 + $0x8] sm:$0xff]  }
 0x3dc   :  { %vm2572_vm13 = vcmp.gt.f32.partialorder %v2565_v24, 0.0  ;;  %v2576_v31 = vmul.f32 0.01, %v2565_v24  ;;  %3504 = vmatprep.subr.bf16.mxu0 %v4993_v26  ;;  %v2579_v32 = vsel %vm2571_vm12, %v2563_v9, %v2575_v27  ;;  %v5057_v9 = vld [vmem:[%s5542_s12] sm:$0xff]   ;;  %v5058_v26 = vld [vmem:[%s5542_s12 + $0xf8] sm:$0xff]   ;;  %v5060_v27 = vld [vmem:[%s5542_s12 + $0xf0] sm:$0xff]  }
 0x3dd   :  { %v2567_v30 = vpop.f32.mrf.mxu1  ;;  %v5402_v34 = vpack.c.bf16 %v2579_v32, %v2579_v32  ;;  %v5062_v28 = vld [vmem:[%s5542_s12 + $0xe8] sm:$0xff]   ;;  %v5065_v32 = vld [vmem:[%s5542_s12 + $0xa0] sm:$0xff]  }
 0x3de   :  { %v2580_v33 = vsel %vm2572_vm13, %v2565_v24, %v2576_v31  ;;  %v5061_v24 = vld [vmem:[%s5542_s12 + $0xb0] sm:$0xff]   ;;  %v5064_v31 = vld [vmem:[%s5542_s12 + $0xe0] sm:$0xff]   ;;  %v5066_v30 = vld [vmem:[%s5542_s12 + $0xd8] sm:$0xff]  }
 0x3df   :  { %3505 = vmatpush2.bf16.msra.mxu0 %v4991_v29  ;;  %v2584_v35 = vpack.c.bf16 %v2580_v33, %v2580_v33  ;;  %v5063_v29 = vld [vmem:[%s5542_s12 + $0xa8] sm:$0xff]   ;;  %v5067_v33 = vld [vmem:[%s5542_s12 + $0x98] sm:$0xff]  }
 0x3e0   :  { %4389 = vmatprep.subr.bf16.mxu0 %v5042_v44 }
 0x3e1   :  { %3465 = vmatprep.mubr.bf16.mxu1 %v2584_v35 }
 0x3e2   :  { %3466 = vmatmul.mubr.bf16.vlgmr.msra.gmra.mxu1 %v5402_v34  ;;  %3507 = vmatmul.mubr.bf16.vlgmr.msra.gmra.mxu0 %v5391_v48  ;;  %v5045_v48 = vld [vmem:[%s5542_s12 + $0x30] sm:$0xff]  }
 0x3e3   :  { %3516 = vmatpush1.bf16.msra.mxu1 %v4994_v36  ;;  %3547 = vmatprep.mubr.bf16.mxu1 %v2584_v35  ;;  %v5068_v35 = vld [vmem:[%s5542_s12 + $0xd0] sm:$0xff]  }
 0x3e4   :  { %3517 = vmatprep.subr.bf16.mxu1 %v4999_v38  ;;  %4390 = vmatpush3.bf16.msra.mxu0 %v5043_v21  ;;  %v5069_v36 = vld [vmem:[%s5542_s12 + $0x90] sm:$0xff]   ;;  %v5070_v38 = vld [vmem:[%s5542_s12 + $0xc8] sm:$0xff]   ;;  %v5073_v21 = vld [vmem:[%s5542_s12 + $0x80] sm:$0xff]  }
 0x3e5   :  { %4391 = vmatprep.subr.bf16.mxu0 %v5044_v46  ;;  %v2713_v46 = vld [vmem:[%s5541_s11] sm:$0xf] }
 0x3e7   :  { %3518 = vmatpush1.bf16.msra.mxu1 %v4997_v39 }
 0x3e8   :  { %3519 = vmatprep.subr.bf16.mxu1 %v5002_v41  ;;  %4392 = vmatpush3.bf16.msra.mxu0 %v5045_v48  ;;  %v5071_v41 = vld [vmem:[%s5542_s12 + $0x88] sm:$0xff]  }
 0x3e9   :  { %4393 = vmatprep.subr.bf16.mxu0 %v5046_v50 }
 0x3eb   :  { %3520 = vmatpush1.bf16.msra.mxu1 %v5000_v42 }
 0x3ec   :  { %3521 = vmatprep.subr.bf16.mxu1 %v5005_v43  ;;  %4394 = vmatpush3.bf16.msra.mxu0 %v5047_v51  ;;  %v5072_v43 = vld [vmem:[%s5542_s12 + $0xc0] sm:$0xff]  }
 0x3ed   :  { %4395 = vmatprep.subr.bf16.mxu0 %v5048_v52 }
 0x3ef   :  { %3522 = vmatpush1.bf16.msra.mxu1 %v5003_v47  ;;  %v2714_v47 = vunpack.c.l.bf16 %v2713_v46 }
 0x3f0   :  { %3523 = vmatprep.subr.bf16.mxu1 %v5008_v49  ;;  %4396 = vmatpush3.bf16.msra.mxu0 %v5049_v54 }
 0x3f1   :  { %4397 = vmatprep.subr.bf16.mxu0 %v5050_v56  ;;  %v2719_v48 = vrot.slane %v2714_v47, %v5312_v58  ;;  %v2723_v49 = vrot.slane %v2714_v47, %v5318_v63 }
 0x3f3   :  { %3524 = vmatpush1.bf16.msra.mxu1 %v5006_v40  ;;  %v2739_v50 = vrot.slane %v2719_v48, %v5312_v58  ;;  %v2743_v40 = vrot.slane %v2723_v49, %v5312_v58 }
 0x3f4   :  { %3525 = vmatprep.subr.bf16.mxu1 %v5011_v45  ;;  %4398 = vmatpush3.bf16.msra.mxu0 %v5051_v59 }
 0x3f5   :  { %4399 = vmatprep.subr.bf16.mxu0 %v5052_v62 }
 0x3f7   :  { %3526 = vmatpush1.bf16.msra.mxu1 %v5009_v53 }
 0x3f8   :  { %3527 = vmatprep.subr.bf16.mxu1 %v5014_v55  ;;  %4400 = vmatpush3.bf16.msra.mxu0 %v5053_v20 }
 0x3f9   :  { %4401 = vmatprep.subr.bf16.mxu0 %v5054_v22 }
 0x3fb   :  { %3528 = vmatpush1.bf16.msra.mxu1 %v5012_v57 }
 0x3fc   :  { %3529 = vmatprep.subr.bf16.mxu1 %v5017_v60  ;;  %4402 = vmatpush3.bf16.msra.mxu0 %v5055_v23 }
 0x3fd   :  { %4403 = vmatprep.subr.bf16.mxu0 %v5056_v25 }
 0x3ff   :  { %3530 = vmatpush1.bf16.msra.mxu1 %v5015_v0 }
 0x400   :  { %3531 = vmatprep.subr.bf16.mxu1 %v5020_v1  ;;  %4404 = vmatpush3.bf16.msra.mxu0 %v5057_v9 }
 0x403   :  { %3532 = vmatpush2.bf16.msra.mxu1 %v5018_v2 }
 0x404   :  { %3533 = vmatprep.subr.bf16.mxu1 %v5023_v3 }
 0x407   :  { %3534 = vmatpush2.bf16.msra.mxu1 %v5021_v4 }
 0x408   :  { %3535 = vmatprep.subr.bf16.mxu1 %v5026_v5 }
 0x40b   :  { %3536 = vmatpush2.bf16.msra.mxu1 %v5024_v6  ;;  %v2727_v6 = vrot.slane %v2714_v47, %v5314_v16 }
 0x40c   :  { %3537 = vmatprep.subr.bf16.mxu1 %v5029_v7  ;;  %v2731_v7 = vrot.slane %v2714_v47, %v5320_v37 }
 0x40f   :  { %3538 = vmatpush2.bf16.msra.mxu1 %v5027_v8  ;;  %v2747_v8 = vrot.slane %v2727_v6, %v5312_v58 }
 0x410   :  { %3539 = vmatprep.subr.bf16.mxu1 %v5032_v11  ;;  %v2751_v11 = vrot.slane %v2731_v7, %v5312_v58 }
 0x413   :  { %3540 = vmatpush2.bf16.msra.mxu1 %v5030_v12 }
 0x414   :  { %3541 = vmatprep.subr.bf16.mxu1 %v5035_v13 }
 0x417   :  { %3542 = vmatpush2.bf16.msra.mxu1 %v5033_v14 }
 0x418   :  { %3543 = vmatprep.subr.bf16.mxu1 %v5038_v15 }
 0x41b   :  { %3544 = vmatpush2.bf16.msra.mxu1 %v5036_v17 }
 0x41c   :  { %3545 = vmatprep.subr.bf16.mxu1 %v5041_v18 }
 0x41f   :  { %3546 = vmatpush2.bf16.msra.mxu1 %v5039_v19 }
 0x420   :  { %4411 = vmatprep.subr.bf16.mxu1 %v5058_v26 }
 0x422   :  { %3548 = vmatmul.mubr.bf16.vlgmr.msra.gmra.mxu1 %v5402_v34 }
 0x423   :  { %4412 = vmatpush3.bf16.msra.mxu1 %v5059_v10 }
 0x424   :  { %4413 = vmatprep.subr.bf16.mxu1 %v5060_v27 }
 0x427   :  { %4414 = vmatpush3.bf16.msra.mxu1 %v5061_v24 }
 0x428   :  { %4415 = vmatprep.subr.bf16.mxu1 %v5062_v28  ;;  %v3636_v28 = vld [vmem:[%s5543_s13] sm:$0x1] }
 0x42b   :  { %4416 = vmatpush3.bf16.msra.mxu1 %v5063_v29  ;;  %v3637_v29 = vunpack.c.l.bf16 %v3636_v28 }
 0x42c   :  { %4417 = vmatprep.subr.bf16.mxu1 %v5064_v31 }
 0x42d   :  { %v3641_v31 = vrot.slane %v3637_v29, %v5312_v58 }
 0x42f   :  { %4418 = vmatpush3.bf16.msra.mxu1 %v5065_v32 }
 0x430   :  { %4419 = vmatprep.subr.bf16.mxu1 %v5066_v30 }
 0x433   :  { %4420 = vmatpush3.bf16.msra.mxu1 %v5067_v33 }
 0x434   :  { %4421 = vmatprep.subr.bf16.mxu1 %v5068_v35 }
 0x437   :  { %4422 = vmatpush3.bf16.msra.mxu1 %v5069_v36 }
 0x438   :  { %4423 = vmatprep.subr.bf16.mxu1 %v5070_v38 }
 0x43b   :  { %4424 = vmatpush3.bf16.msra.mxu1 %v5071_v41 }
 0x43c   :  { %4425 = vmatprep.subr.bf16.mxu1 %v5072_v43  ;;  %v3917_v43 = vld [vmem:[%s5544_s14] sm:$0x1] }
 0x43f   :  { %4426 = vmatpush3.bf16.msra.mxu1 %v5073_v21  ;;  %v3918_v21 = vunpack.c.l.bf16 %v3917_v43 }
 0x441   :  { %v3929_v47 = vrot.slane %v3918_v21, %v5312_v58  ;;  %v3943_v48 = vrot.slane %v3918_v21, %v5316_v61 }
 0x462   :  { %v3426_v34 = vpop.f32.mrf.mxu0 }
 0x463   :  { %v3427_v51 = vadd.f32 %v3426_v34, %v2739_v50 }
 0x464   :  { %v3428_v39 = vpop.f32.mrf.mxu0 }
 0x465   :  { %v3429_v53 = vadd.f32 %v3428_v39, %v2743_v40 }
 0x466   :  { %v3430_v42 = vpop.f32.mrf.mxu0 }
 0x468   :  { %v3431_v44 = vpop.f32.mrf.mxu0 }
 0x469   :  { %v3919_v44 = vld [vmem:[%s5545_s15] sm:$0x1] }
 0x46a   :  { %v3920_v46 = vunpack.c.l.bf16 %v3919_v44 }
 0x46c   :  { %v3934_v49 = vrot.slane %v3920_v46, %v5312_v58 }
 0x4a2   :  { %v3467_v45 = vpop.f32.mrf.mxu1  ;;  %v3508_v52 = vpop.f32.mrf.mxu0 }
 0x4a3   :  { %v3468_v54 = vadd.f32 %v3467_v45, %v3427_v51  ;;  %v3509_v12 = vadd.f32 %v3508_v52, %v2747_v8 }
 0x4a4   :  { %v3469_v55 = vpop.f32.mrf.mxu1  ;;  %v3510_v56 = vpop.f32.mrf.mxu0 }
 0x4a5   :  { %vm3556_vm14 = vcmp.gt.f32.partialorder %v3468_v54, 0.0  ;;  %v3560_v57 = vmul.f32 0.01, %v3468_v54  ;;  %v3470_v59 = vadd.f32 %v3469_v55, %v3429_v53  ;;  %v3511_v14 = vadd.f32 %v3510_v56, %v2751_v11 }
 0x4a6   :  { %v3471_v60 = vpop.f32.mrf.mxu1  ;;  %v3512_v62 = vpop.f32.mrf.mxu0 }
 0x4a7   :  { %vm3557_vm15 = vcmp.gt.f32.partialorder %v3470_v59, 0.0  ;;  %v3561_v0 = vmul.f32 0.01, %v3470_v59  ;;  %v3564_v1 = vsel %vm3556_vm14, %v3468_v54, %v3560_v57 }
 0x4a8   :  { %v3472_v63 = vpop.f32.mrf.mxu1  ;;  %v3513_v2 = vpop.f32.mrf.mxu0  ;;  %v3568_v5 = vpack.c.bf16 %v3564_v1, %v3564_v1 }
 0x4a9   :  { %v3565_v3 = vsel %vm3557_vm15, %v3470_v59, %v3561_v0 }
 0x4aa   :  { %v3569_v4 = vpack.c.bf16 %v3565_v3, %v3565_v3 }
 0x4ac   :  { %3866 = vmatprep.mubr.bf16.mxu0 %v3569_v4 }
 0x4ad   :  { %3867 = vmatmul.mubr.bf16.vlgmr.msra.gmra.mxu0 %v3568_v5 }
 0x4e2   :  { %v3549_v13 = vpop.f32.mrf.mxu1 }
 0x4e3   :  { %v3550_v15 = vadd.f32 %v3549_v13, %v3509_v12 }
 0x4e4   :  { %v3551_v17 = vpop.f32.mrf.mxu1 }
 0x4e5   :  { %vm3558_vm0 = vcmp.gt.f32.partialorder %v3550_v15, 0.0  ;;  %v3562_v18 = vmul.f32 0.01, %v3550_v15  ;;  %v3552_v19 = vadd.f32 %v3551_v17, %v3511_v14 }
 0x4e6   :  { %v3553_v20 = vpop.f32.mrf.mxu1 }
 0x4e7   :  { %vm3559_vm1 = vcmp.gt.f32.partialorder %v3552_v19, 0.0  ;;  %v3563_v22 = vmul.f32 0.01, %v3552_v19  ;;  %v3566_v23 = vsel %vm3558_vm0, %v3550_v15, %v3562_v18 }
 0x4e8   :  { %v3554_v25 = vpop.f32.mrf.mxu1  ;;  %v3570_v37 = vpack.c.bf16 %v3566_v23, %v3566_v23 }
 0x4e9   :  { %v3567_v16 = vsel %vm3559_vm1, %v3552_v19, %v3563_v22 }
 0x4ea   :  { %v3571_v9 = vpack.c.bf16 %v3567_v16, %v3567_v16 }
 0x4ec   :  { %3906 = vmatprep.mubr.bf16.mxu1 %v3571_v9 }
 0x4ed   :  { %3907 = vmatmul.mubr.bf16.vlgmr.msra.gmra.mxu1 %v3570_v37 }
 0x56d   :  { %v4405_v26 = vpop.f32.mrf.mxu0 }
 0x56f   :  { %v4406_v10 = vpop.f32.mrf.mxu0 }
 0x570   :  { %v4407_v32 = vadd.f32 %v4406_v10, %v4405_v26 }
 0x571   :  { %v4408_v27 = vpop.f32.mrf.mxu0 }
 0x572   :  { %v3869_v35 = vadd.f32 %v4407_v32, %v3641_v31 }
 0x573   :  { %v4409_v24 = vpop.f32.mrf.mxu0 }
 0x5ad   :  { %v4427_v30 = vpop.f32.mrf.mxu1 }
 0x5af   :  { %v4428_v33 = vpop.f32.mrf.mxu1 }
 0x5b0   :  { %v4429_v36 = vadd.f32 %v4428_v33, %v4427_v30 }
 0x5b1   :  { %v4430_v34 = vpop.f32.mrf.mxu1 }
 0x5b2   :  { %v3909_v38 = vadd.f32 %v4429_v36, %v3869_v35 }
 0x5b3   :  { %v4431_v39 = vpop.f32.mrf.mxu1 }
 0x5b4   :  { %vm3914_vm2 = vcmp.gt.f32.partialorder %v3909_v38, 0.0  ;;  %v3915_v41 = vmul.f32 0.01, %v3909_v38 }
 0x5b6   :  { %v3916_v42 = vsel %vm3914_vm2, %v3909_v38, %v3915_v41 }
 0x5b7   :  { %3937 = vperm.xlu0 %4453, %v3916_v42   ;;  %3923 = vperm.xlu1 %4452, %v3916_v42  }
 0x632   :  { %v3938_v50 = vpop.permute.xlu0 %3937  ;;  %v3924_v40 = vpop.permute.xlu1 %3923 }
 0x633   :  { %v3930_v51 = vmul.f32 %v3929_v47, %v3924_v40  ;;  %v3944_v45 = vmul.f32 %v3943_v48, %v3938_v50 }
 0x635   :  { %v3935_v52 = vadd.f32 %v3934_v49, %v3930_v51 }
 0x637   :  { %v3945_v53 = vadd.f32 %v3944_v45, %v3935_v52 }
 0x639   :  { %3947 = vst.msk [vmem:[%s5546_s16] sm:$0xff] %vm3946_vm3, %v3945_v53 }
 0x63a   :  { %3952 = vsyncpa [#allocation3], 1 }
 0x63b   :  { %3953 = vsyncpa [#allocation5], 1 }

</bundles_post_ra>
